<compile_context>
chip_gen: v6e
topology: v6e:2x2x1
jax: 0.10.0
libtpu: 0.0.40
codegen_flags: <defaults>
</compile_context>

<pallas_src>
import numpy as np
import jax
import jax.numpy as jnp
from jax.experimental import pallas as pl
from jax.experimental.pallas import tpu as pltpu

# Both the Pallas kernel and the pure-JAX reference trace their dots under
# this config so the correctness check can use a tight (1e-5) tolerance.
jax.config.update("jax_default_matmul_precision", "highest")

# --- model configuration (small, consistent with the module) ---------------
OBS_DIM = 32         # observation_space.shape == (32,)  -> no conv stack
HIDDEN_STATE = 32    # recurrence['hidden_state_size'] (== OBS_DIM, so the
                     # lazily-created input_to_hidden_proj is never built)
HIDDEN = 32          # config['hidden_layer_size']
NUM_ACTIONS = 6      # action_space_shape == (6,)  (single policy branch)
BATCH = 2
LN_EPS = 1e-5
LANES = 128


def _actor_critic_kernel(acts_ref, w_ref, b_ref, out_ref):
    """Fused single-step xLSTM block + actor/critic heads.

    acts_ref : (Bp, 128)  lanes 0:32 obs, 32:64 h_m, 64:96 h_s, 96:128 zero
    w_ref    : (64, 768)  six (64,128) weight blocks (see pack_weights)
    b_ref    : (16, 128)  bias / layernorm slab (see pack_biases)
    out_ref  : (Bp, 128)  lanes 0:6 logits, 6 value, 32:64 h_m', 64:96 h_s'
    """
    Bp = acts_ref.shape[0]
    H = HIDDEN_STATE

    acts = acts_ref[...]
    bias = b_ref[...]

    x = acts[:, 0:H]                     # obs (x_proj == x: in == hidden size)
    h_m = acts[:, H:2 * H]
    h_s64 = acts[:, 2 * H:2 * H + 64]    # [h_s | zeros]  -> (Bp, 64)

    def mm(inp64, blk, brow):
        # Uniform (Bp,64) @ (64,128) + bias row. Unused weight rows/cols are 0.
        w = w_ref[:, blk * LANES:(blk + 1) * LANES]
        return (jnp.dot(inp64, w, preferred_element_type=jnp.float32)
                + bias[brow:brow + 1, :])

    # ---- xLSTMBlock, single time step --------------------------------------
    # NOTE: mlstm_qkv(x) and slstm_proj are dead code in the reference
    # forward() (their results are never used) -> intentionally not computed.
    qkv = mm(h_s64, 0, 0)                              # q|k|v in cols 0:96
    q_s = qkv[:, 0:H]
    k_s = qkv[:, H:2 * H]
    v_s = qkv[:, 2 * H:3 * H]
    h_s_cand = jax.nn.sigmoid(q_s * k_s) * v_s         # (Bp, 32)

    # TODO(synk): if OBS_DIM != HIDDEN_STATE the reference lazily builds an
    # input_to_hidden_proj Linear; not needed for this configuration.

    # gate_s = sigmoid(slstm_gate(cat([h_s_cand, h_m])))  -- one 64-in matmul
    gate_s = jax.nn.sigmoid(
        mm(jnp.concatenate([h_s_cand, h_m], axis=1), 1, 1)[:, 0:H])
    h_s_new = gate_s * h_s_cand + (1.0 - gate_s) * h_m

    # gate_m = sigmoid(mlstm_gate(cat([x_proj, h_s_new]))) -- one 64-in matmul
    gate_m = jax.nn.sigmoid(
        mm(jnp.concatenate([x, h_s_new], axis=1), 2, 2)[:, 0:H])
    h_m_new = gate_m * x + (1.0 - gate_m) * h_m

    # Both layernorms as a single stacked reduction: rows 0:Bp = h_m, Bp: = h_s
    stacked = jnp.concatenate([h_m_new, h_s_new], axis=0)        # (2Bp, 32)
    mu = jnp.mean(stacked, axis=-1, keepdims=True)
    var = jnp.mean(jnp.square(stacked - mu), axis=-1, keepdims=True)
    norm = (stacked - mu) * jax.lax.rsqrt(var + LN_EPS)
    h_m_out = norm[:Bp] * bias[8:9, 0:H] + bias[9:10, 0:H]
    h_s_out = norm[Bp:] * bias[10:11, 0:H] + bias[11:12, 0:H]

    # ---- shared trunk + fused heads (reference: h = h_s_out) ----------------
    # lin_hidden: weight rows 32:64 are zero, so the h_m_out half is ignored.
    h = jnp.maximum(mm(jnp.concatenate([h_s_out, h_m_out], axis=1), 3, 3), 0.0)
    # lin_policy || lin_value fused: policy cols 0:32, value cols 32:64
    hpv = jnp.maximum(mm(h[:, 0:64], 4, 4), 0.0)
    # actor || value heads fused (block-diagonal): logits cols 0:6, value col 6
    head = mm(hpv[:, 0:64], 5, 5)

    # One lane-dense 128-wide output slab (head cols 96:128 are exactly zero).
    out_ref[...] = jnp.concatenate(
        [head[:, 0:H], h_m_out, h_s_out, head[:, 3 * H:4 * H]], axis=1)


# ------------------------- host-side parameter packing ----------------------
def _pad2(a, rows, cols):
    return jnp.pad(a, ((0, rows - a.shape[0]), (0, cols - a.shape[1])))


def pack_weights(p):
    """(64, 768) slab: six (64, 128) blocks, zero where unused."""
    H, A = HIDDEN_STATE, NUM_ACTIONS
    blk_qkv = _pad2(jnp.concatenate([p["w_sq"], p["w_sk"], p["w_sv"]], axis=1),
                    64, LANES)                                    # rows 0:32
    blk_sg = _pad2(jnp.concatenate([p["w_sg_c"], p["w_sg_m"]], axis=0),
                   64, LANES)                                     # 64-row gate
    blk_mg = _pad2(jnp.concatenate([p["w_mg_x"], p["w_mg_s"]], axis=0),
                   64, LANES)
    blk_hid = _pad2(p["w_hid"], 64, LANES)
    blk_pv = _pad2(jnp.concatenate([p["w_pol"], p["w_val"]], axis=1), 64, LANES)
    blk_av = jnp.zeros((64, LANES), jnp.float32)
    blk_av = blk_av.at[0:H, 0:A].set(p["w_act"])       # logits from h_policy
    blk_av = blk_av.at[H:2 * H, A:A + 1].set(p["w_v"])  # value  from h_value
    return jnp.concatenate([blk_qkv, blk_sg, blk_mg, blk_hid, blk_pv, blk_av],
                           axis=1)


def pack_biases(p):
    """(16, 128) slab: rows 0..5 matmul biases, rows 8..11 layernorm params."""
    H, A = HIDDEN_STATE, NUM_ACTIONS
    b = jnp.zeros((16, LANES), jnp.float32)
    b = b.at[0, 0:3 * H].set(
        jnp.concatenate([p["b_sq"], p["b_sk"], p["b_sv"]], axis=1)[0])
    b = b.at[1, 0:H].set(p["b_sg"][0])
    b = b.at[2, 0:H].set(p["b_mg"][0])
    b = b.at[3, 0:H].set(p["b_hid"][0])
    b = b.at[4, 0:2 * H].set(
        jnp.concatenate([p["b_pol"], p["b_val"]], axis=1)[0])
    b = b.at[5, 0:A].set(p["b_act"][0])
    b = b.at[5, A].set(p["b_v"][0, 0])
    b = b.at[8, 0:H].set(p["g_m"][0])
    b = b.at[9, 0:H].set(p["be_m"][0])
    b = b.at[10, 0:H].set(p["g_s"][0])
    b = b.at[11, 0:H].set(p["be_s"][0])
    return b


def init_params(key):
    """Deterministic synthetic parameters (shapes mirror the nn.Module)."""
    def dense(k, fan_in, fan_out, scale=0.1):
        kw, kb = jax.random.split(k)
        w = scale * jax.random.normal(kw, (fan_in, fan_out), jnp.float32)
        b = scale * jax.random.normal(kb, (1, fan_out), jnp.float32)
        return w, b

    keys = jax.random.split(key, 16)
    H, HID, A = HIDDEN_STATE, HIDDEN, NUM_ACTIONS
    p = {}
    # xLSTMBlock.slstm_qkv : Linear(H, 3H) split into q/k/v columns
    p["w_sq"], p["b_sq"] = dense(keys[0], H, H)
    p["w_sk"], p["b_sk"] = dense(keys[1], H, H)
    p["w_sv"], p["b_sv"] = dense(keys[2], H, H)
    # xLSTMBlock.slstm_gate : Linear(2H, H) split along input rows
    p["w_sg_c"], p["b_sg"] = dense(keys[3], H, H)
    p["w_sg_m"], _ = dense(keys[4], H, H)
    # xLSTMBlock.mlstm_gate : Linear(2H, H) split along input rows
    p["w_mg_x"], p["b_mg"] = dense(keys[5], H, H)
    p["w_mg_s"], _ = dense(keys[6], H, H)
    # LayerNorms (torch default init: weight=1, bias=0)
    p["g_m"] = jnp.ones((1, H), jnp.float32)
    p["be_m"] = jnp.zeros((1, H), jnp.float32)
    p["g_s"] = jnp.ones((1, H), jnp.float32)
    p["be_s"] = jnp.zeros((1, H), jnp.float32)
    # heads
    p["w_hid"], p["b_hid"] = dense(keys[7], H, HID)
    p["w_pol"], p["b_pol"] = dense(keys[8], HID, HID)
    p["w_val"], p["b_val"] = dense(keys[9], HID, HID)
    p["w_act"], p["b_act"] = dense(keys[10], HID, A)
    p["w_v"], p["b_v"] = dense(keys[11], HID, 1)
    return p


def actor_critic_forward(obs, recurrent_cell, params):
    """Mirrors ActorCriticModel.forward(obs, recurrent_cell, sequence_length=1).

    obs: (B, OBS_DIM) float32
    recurrent_cell: (h_m, h_s) each (1, B, HIDDEN_STATE) float32
    Returns ([policy_logits], value (B,), (h_m_out, h_s_out) each (1, B, H)).
    """
    h_m_in, h_s_in = recurrent_cell
    B = obs.shape[0]
    Bp = max(8, -(-B // 8) * 8)            # pad batch to a sublane multiple
    H = HIDDEN_STATE

    # reference: recurrent_cell.transpose(0, 1) -> (B, 1, H) -> we use (B, H)
    h_m0 = jnp.transpose(h_m_in, (1, 0, 2)).reshape(B, H)
    h_s0 = jnp.transpose(h_s_in, (1, 0, 2)).reshape(B, H)

    # Single lane-dense activation slab: [obs | h_m | h_s | 0]
    acts = jnp.zeros((Bp, LANES), jnp.float32)
    acts = acts.at[:B, 0:H].set(obs)
    acts = acts.at[:B, H:2 * H].set(h_m0)
    acts = acts.at[:B, 2 * H:3 * H].set(h_s0)

    w_slab = pack_weights(params)          # (64, 768) -- one input DMA
    b_slab = pack_biases(params)           # (16, 128) -- one input DMA

    vmem = pl.BlockSpec(memory_space=pltpu.MemorySpace.VMEM)
    out = pl.pallas_call(
        _actor_critic_kernel,
        out_shape=jax.ShapeDtypeStruct((Bp, LANES), jnp.float32),
        in_specs=[vmem, vmem, vmem],
        out_specs=vmem,
    )(acts, w_slab, b_slab)

    logits = out[:B, 0:NUM_ACTIONS]
    value = out[:B, NUM_ACTIONS]                 # reference .reshape(-1)
    h_m_out = out[:B, H:2 * H]
    h_s_out = out[:B, 2 * H:3 * H]
    new_cell = (h_m_out[None, :, :], h_s_out[None, :, :])   # (1, B, H) each
    # TODO(synk): torch.distributions.Categorical has no Pallas equivalent;
    # raw logits are returned per policy branch instead.
    return [logits], value, new_cell


def actor_critic_reference(obs, recurrent_cell, params):
    """Pure-JAX reference of the same forward pass (for correctness check)."""
    h_m_in, h_s_in = recurrent_cell
    B = obs.shape[0]
    h_m = jnp.transpose(h_m_in, (1, 0, 2)).reshape(B, HIDDEN_STATE)
    h_s = jnp.transpose(h_s_in, (1, 0, 2)).reshape(B, HIDDEN_STATE)
    p = params

    q_s = h_s @ p["w_sq"] + p["b_sq"]
    k_s = h_s @ p["w_sk"] + p["b_sk"]
    v_s = h_s @ p["w_sv"] + p["b_sv"]
    h_s_cand = jax.nn.sigmoid(q_s * k_s) * v_s
    x_proj = obs
    gate_s = jax.nn.sigmoid(h_s_cand @ p["w_sg_c"] + h_m @ p["w_sg_m"] + p["b_sg"])
    h_s_new = gate_s * h_s_cand + (1 - gate_s) * h_m
    gate_m = jax.nn.sigmoid(x_proj @ p["w_mg_x"] + h_s_new @ p["w_mg_s"] + p["b_mg"])
    h_m_new = gate_m * x_proj + (1 - gate_m) * h_m

    def ln(v, g, b):
        mu = jnp.mean(v, -1, keepdims=True)
        var = jnp.mean((v - mu) ** 2, -1, keepdims=True)
        return (v - mu) * jax.lax.rsqrt(var + LN_EPS) * g + b

    h_m_out = ln(h_m_new, p["g_m"], p["be_m"])
    h_s_out = ln(h_s_new, p["g_s"], p["be_s"])

    h = jax.nn.relu(h_s_out @ p["w_hid"] + p["b_hid"])
    h_pol = jax.nn.relu(h @ p["w_pol"] + p["b_pol"])
    h_val = jax.nn.relu(h @ p["w_val"] + p["b_val"])
    logits = h_pol @ p["w_act"] + p["b_act"]
    value = (h_val @ p["w_v"] + p["b_v"]).reshape(-1)
    return logits, value, h_m_out, h_s_out


if __name__ == "__main__":
    key = jax.random.PRNGKey(0)
    k_obs, k_hm, k_hs, k_par = jax.random.split(key, 4)

    obs = jax.random.normal(k_obs, (BATCH, OBS_DIM), jnp.float32)
    # init_recurrent_cell_states-style shapes: (1, num_sequences, hidden_state)
    h_m = 0.1 * jax.random.normal(k_hm, (1, BATCH, HIDDEN_STATE), jnp.float32)
    h_s = 0.1 * jax.random.normal(k_hs, (1, BATCH, HIDDEN_STATE), jnp.float32)
    params = init_params(k_par)

    pi_logits, value, new_cell = actor_critic_forward(obs, (h_m, h_s), params)
    jax.block_until_ready((pi_logits, value, new_cell))

    # correctness check against the pure-JAX reference (tight f32 tolerance)
    ref_logits, ref_value, ref_hm, ref_hs = actor_critic_reference(
        obs, (h_m, h_s), params)
    np.testing.assert_allclose(np.asarray(pi_logits[0]), np.asarray(ref_logits),
                               atol=1e-5, rtol=1e-5)
    np.testing.assert_allclose(np.asarray(value), np.asarray(ref_value),
                               atol=1e-5, rtol=1e-5)
    np.testing.assert_allclose(np.asarray(new_cell[0][0]), np.asarray(ref_hm),
                               atol=1e-5, rtol=1e-5)
    np.testing.assert_allclose(np.asarray(new_cell[1][0]), np.asarray(ref_hs),
                               atol=1e-5, rtol=1e-5)

    print("KERNEL_OK")
</pallas_src>

<mosaic_0001>
module attributes {stable_mosaic.version = 11 : i64} {
  func.func @_actor_critic_kernel(%arg0: memref<8x128xf32, #tpu.memory_space<vmem>>, %arg1: memref<64x768xf32, #tpu.memory_space<vmem>>, %arg2: memref<16x128xf32, #tpu.memory_space<vmem>>, %arg3: memref<8x128xf32, #tpu.memory_space<vmem>>) attributes {dimension_semantics = [], scalar_prefetch = 0 : i64, scratch_operands = 0 : i64, tpu.core_type = #tpu.core_type<tc>} {
    %c0 = arith.constant 0 : index
    %c0_0 = arith.constant 0 : index
    %0 = vector.load %arg0[%c0, %c0_0] : memref<8x128xf32, #tpu.memory_space<vmem>>, vector<8x128xf32>
    %c0_1 = arith.constant 0 : index
    %c0_2 = arith.constant 0 : index
    %1 = vector.load %arg2[%c0_1, %c0_2] : memref<16x128xf32, #tpu.memory_space<vmem>>, vector<16x128xf32>
    %2 = vector.extract_strided_slice %0 {offsets = [0, 0], sizes = [8, 32], strides = [1, 1]} : vector<8x128xf32> to vector<8x32xf32>
    %3 = vector.extract_strided_slice %0 {offsets = [0, 32], sizes = [8, 32], strides = [1, 1]} : vector<8x128xf32> to vector<8x32xf32>
    %4 = vector.extract_strided_slice %0 {offsets = [0, 64], sizes = [8, 64], strides = [1, 1]} : vector<8x128xf32> to vector<8x64xf32>
    %c0_3 = arith.constant 0 : index
    %c0_4 = arith.constant 0 : index
    %5 = vector.load %arg1[%c0_3, %c0_4] : memref<64x768xf32, #tpu.memory_space<vmem>>, vector<64x128xf32>
    %cst = arith.constant dense<0.000000e+00> : vector<8x128xf32>
    %6 = tpu.matmul %4, %5, %cst {dimension_numbers = #tpu.dot_dimension_numbers<[1], [0], [0], [1], [0, 0, 1, 1], [], []>, precision = #tpu.contract_precision<fp32>} : vector<8x64xf32>, vector<64x128xf32>, vector<8x128xf32> -> vector<8x128xf32>
    %7 = vector.extract_strided_slice %1 {offsets = [0, 0], sizes = [1, 128], strides = [1, 1]} : vector<16x128xf32> to vector<1x128xf32>
    %8 = vector.broadcast %7 : vector<1x128xf32> to vector<8x128xf32>
    %9 = arith.addf %6, %8 : vector<8x128xf32>
    %10 = vector.extract_strided_slice %9 {offsets = [0, 0], sizes = [8, 32], strides = [1, 1]} : vector<8x128xf32> to vector<8x32xf32>
    %11 = vector.extract_strided_slice %9 {offsets = [0, 32], sizes = [8, 32], strides = [1, 1]} : vector<8x128xf32> to vector<8x32xf32>
    %12 = vector.extract_strided_slice %9 {offsets = [0, 64], sizes = [8, 32], strides = [1, 1]} : vector<8x128xf32> to vector<8x32xf32>
    %13 = arith.mulf %10, %11 : vector<8x32xf32>
    %14 = arith.negf %13 : vector<8x32xf32>
    %15 = math.exp %14 : vector<8x32xf32>
    %cst_5 = arith.constant 1.000000e+00 : f32
    %16 = vector.broadcast %cst_5 : f32 to vector<8x32xf32>
    %17 = arith.addf %16, %15 : vector<8x32xf32>
    %18 = arith.divf %16, %17 : vector<8x32xf32>
    %19 = arith.mulf %18, %12 : vector<8x32xf32>
    %20 = tpu.concatenate %19, %3 in 1 : vector<8x32xf32>, vector<8x32xf32> -> vector<8x64xf32>
    %c0_6 = arith.constant 0 : index
    %c128 = arith.constant 128 : index
    %21 = vector.load %arg1[%c0_6, %c128] : memref<64x768xf32, #tpu.memory_space<vmem>>, vector<64x128xf32>
    %cst_7 = arith.constant dense<0.000000e+00> : vector<8x128xf32>
    %22 = tpu.matmul %20, %21, %cst_7 {dimension_numbers = #tpu.dot_dimension_numbers<[1], [0], [0], [1], [0, 0, 1, 1], [], []>, precision = #tpu.contract_precision<fp32>} : vector<8x64xf32>, vector<64x128xf32>, vector<8x128xf32> -> vector<8x128xf32>
    %23 = vector.extract_strided_slice %1 {offsets = [1, 0], sizes = [1, 128], strides = [1, 1]} : vector<16x128xf32> to vector<1x128xf32>
    %24 = vector.broadcast %23 : vector<1x128xf32> to vector<8x128xf32>
    %25 = arith.addf %22, %24 : vector<8x128xf32>
    %26 = vector.extract_strided_slice %25 {offsets = [0, 0], sizes = [8, 32], strides = [1, 1]} : vector<8x128xf32> to vector<8x32xf32>
    %27 = arith.negf %26 : vector<8x32xf32>
    %28 = math.exp %27 : vector<8x32xf32>
    %cst_8 = arith.constant 1.000000e+00 : f32
    %29 = vector.broadcast %cst_8 : f32 to vector<8x32xf32>
    %30 = arith.addf %29, %28 : vector<8x32xf32>
    %31 = arith.divf %29, %30 : vector<8x32xf32>
    %32 = arith.mulf %31, %19 : vector<8x32xf32>
    %cst_9 = arith.constant 1.000000e+00 : f32
    %33 = vector.broadcast %cst_9 : f32 to vector<8x32xf32>
    %34 = arith.subf %33, %31 : vector<8x32xf32>
    %35 = arith.mulf %34, %3 : vector<8x32xf32>
    %36 = arith.addf %32, %35 : vector<8x32xf32>
    %37 = tpu.concatenate %2, %36 in 1 : vector<8x32xf32>, vector<8x32xf32> -> vector<8x64xf32>
    %c0_10 = arith.constant 0 : index
    %c256 = arith.constant 256 : index
    %38 = vector.load %arg1[%c0_10, %c256] : memref<64x768xf32, #tpu.memory_space<vmem>>, vector<64x128xf32>
    %cst_11 = arith.constant dense<0.000000e+00> : vector<8x128xf32>
    %39 = tpu.matmul %37, %38, %cst_11 {dimension_numbers = #tpu.dot_dimension_numbers<[1], [0], [0], [1], [0, 0, 1, 1], [], []>, precision = #tpu.contract_precision<fp32>} : vector<8x64xf32>, vector<64x128xf32>, vector<8x128xf32> -> vector<8x128xf32>
    %40 = vector.extract_strided_slice %1 {offsets = [2, 0], sizes = [1, 128], strides = [1, 1]} : vector<16x128xf32> to vector<1x128xf32>
    %41 = vector.broadcast %40 : vector<1x128xf32> to vector<8x128xf32>
    %42 = arith.addf %39, %41 : vector<8x128xf32>
    %43 = vector.extract_strided_slice %42 {offsets = [0, 0], sizes = [8, 32], strides = [1, 1]} : vector<8x128xf32> to vector<8x32xf32>
    %44 = arith.negf %43 : vector<8x32xf32>
    %45 = math.exp %44 : vector<8x32xf32>
    %cst_12 = arith.constant 1.000000e+00 : f32
    %46 = vector.broadcast %cst_12 : f32 to vector<8x32xf32>
    %47 = arith.addf %46, %45 : vector<8x32xf32>
    %48 = arith.divf %46, %47 : vector<8x32xf32>
    %49 = arith.mulf %48, %2 : vector<8x32xf32>
    %cst_13 = arith.constant 1.000000e+00 : f32
    %50 = vector.broadcast %cst_13 : f32 to vector<8x32xf32>
    %51 = arith.subf %50, %48 : vector<8x32xf32>
    %52 = arith.mulf %51, %3 : vector<8x32xf32>
    %53 = arith.addf %49, %52 : vector<8x32xf32>
    %54 = tpu.concatenate %53, %36 in 0 : vector<8x32xf32>, vector<8x32xf32> -> vector<16x32xf32>
    %cst_14 = arith.constant dense<0.000000e+00> : vector<16xf32>
    %55 = vector.multi_reduction <add>, %54, %cst_14 [1] : vector<16x32xf32> to vector<16xf32>
    %56 = vector.shape_cast %55 : vector<16xf32> to vector<16x1xf32>
    %cst_15 = arith.constant 3.200000e+01 : f32
    %57 = vector.broadcast %cst_15 : f32 to vector<16x1xf32>
    %58 = arith.divf %56, %57 : vector<16x1xf32>
    %59 = vector.broadcast %58 : vector<16x1xf32> to vector<16x32xf32>
    %60 = arith.subf %54, %59 : vector<16x32xf32>
    %61 = arith.mulf %60, %60 : vector<16x32xf32>
    %cst_16 = arith.constant dense<0.000000e+00> : vector<16xf32>
    %62 = vector.multi_reduction <add>, %61, %cst_16 [1] : vector<16x32xf32> to vector<16xf32>
    %63 = vector.shape_cast %62 : vector<16xf32> to vector<16x1xf32>
    %cst_17 = arith.constant 3.200000e+01 : f32
    %64 = vector.broadcast %cst_17 : f32 to vector<16x1xf32>
    %65 = arith.divf %63, %64 : vector<16x1xf32>
    %66 = vector.broadcast %58 : vector<16x1xf32> to vector<16x32xf32>
    %67 = arith.subf %54, %66 : vector<16x32xf32>
    %cst_18 = arith.constant 9.99999974E-6 : f32
    %68 = vector.broadcast %cst_18 : f32 to vector<16x1xf32>
    %69 = arith.addf %65, %68 : vector<16x1xf32>
    %70 = math.rsqrt %69 : vector<16x1xf32>
    %71 = vector.broadcast %70 : vector<16x1xf32> to vector<16x32xf32>
    %72 = arith.mulf %67, %71 : vector<16x32xf32>
    %73 = vector.extract_strided_slice %72 {offsets = [0, 0], sizes = [8, 32], strides = [1, 1]} : vector<16x32xf32> to vector<8x32xf32>
    %74 = vector.extract_strided_slice %1 {offsets = [8, 0], sizes = [1, 32], strides = [1, 1]} : vector<16x128xf32> to vector<1x32xf32>
    %75 = vector.broadcast %74 : vector<1x32xf32> to vector<8x32xf32>
    %76 = arith.mulf %73, %75 : vector<8x32xf32>
    %77 = vector.extract_strided_slice %1 {offsets = [9, 0], sizes = [1, 32], strides = [1, 1]} : vector<16x128xf32> to vector<1x32xf32>
    %78 = vector.broadcast %77 : vector<1x32xf32> to vector<8x32xf32>
    %79 = arith.addf %76, %78 : vector<8x32xf32>
    %80 = vector.extract_strided_slice %72 {offsets = [8, 0], sizes = [8, 32], strides = [1, 1]} : vector<16x32xf32> to vector<8x32xf32>
    %81 = vector.extract_strided_slice %1 {offsets = [10, 0], sizes = [1, 32], strides = [1, 1]} : vector<16x128xf32> to vector<1x32xf32>
    %82 = vector.broadcast %81 : vector<1x32xf32> to vector<8x32xf32>
    %83 = arith.mulf %80, %82 : vector<8x32xf32>
    %84 = vector.extract_strided_slice %1 {offsets = [11, 0], sizes = [1, 32], strides = [1, 1]} : vector<16x128xf32> to vector<1x32xf32>
    %85 = vector.broadcast %84 : vector<1x32xf32> to vector<8x32xf32>
    %86 = arith.addf %83, %85 : vector<8x32xf32>
    %87 = tpu.concatenate %86, %79 in 1 : vector<8x32xf32>, vector<8x32xf32> -> vector<8x64xf32>
    %c0_19 = arith.constant 0 : index
    %c384 = arith.constant 384 : index
    %88 = vector.load %arg1[%c0_19, %c384] : memref<64x768xf32, #tpu.memory_space<vmem>>, vector<64x128xf32>
    %cst_20 = arith.constant dense<0.000000e+00> : vector<8x128xf32>
    %89 = tpu.matmul %87, %88, %cst_20 {dimension_numbers = #tpu.dot_dimension_numbers<[1], [0], [0], [1], [0, 0, 1, 1], [], []>, precision = #tpu.contract_precision<fp32>} : vector<8x64xf32>, vector<64x128xf32>, vector<8x128xf32> -> vector<8x128xf32>
    %90 = vector.extract_strided_slice %1 {offsets = [3, 0], sizes = [1, 128], strides = [1, 1]} : vector<16x128xf32> to vector<1x128xf32>
    %91 = vector.broadcast %90 : vector<1x128xf32> to vector<8x128xf32>
    %92 = arith.addf %89, %91 : vector<8x128xf32>
    %cst_21 = arith.constant 0.000000e+00 : f32
    %93 = vector.broadcast %cst_21 : f32 to vector<8x128xf32>
    %94 = arith.maximumf %92, %93 : vector<8x128xf32>
    %95 = vector.extract_strided_slice %94 {offsets = [0, 0], sizes = [8, 64], strides = [1, 1]} : vector<8x128xf32> to vector<8x64xf32>
    %c0_22 = arith.constant 0 : index
    %c512 = arith.constant 512 : index
    %96 = vector.load %arg1[%c0_22, %c512] : memref<64x768xf32, #tpu.memory_space<vmem>>, vector<64x128xf32>
    %cst_23 = arith.constant dense<0.000000e+00> : vector<8x128xf32>
    %97 = tpu.matmul %95, %96, %cst_23 {dimension_numbers = #tpu.dot_dimension_numbers<[1], [0], [0], [1], [0, 0, 1, 1], [], []>, precision = #tpu.contract_precision<fp32>} : vector<8x64xf32>, vector<64x128xf32>, vector<8x128xf32> -> vector<8x128xf32>
    %98 = vector.extract_strided_slice %1 {offsets = [4, 0], sizes = [1, 128], strides = [1, 1]} : vector<16x128xf32> to vector<1x128xf32>
    %99 = vector.broadcast %98 : vector<1x128xf32> to vector<8x128xf32>
    %100 = arith.addf %97, %99 : vector<8x128xf32>
    %cst_24 = arith.constant 0.000000e+00 : f32
    %101 = vector.broadcast %cst_24 : f32 to vector<8x128xf32>
    %102 = arith.maximumf %100, %101 : vector<8x128xf32>
    %103 = vector.extract_strided_slice %102 {offsets = [0, 0], sizes = [8, 64], strides = [1, 1]} : vector<8x128xf32> to vector<8x64xf32>
    %c0_25 = arith.constant 0 : index
    %c640 = arith.constant 640 : index
    %104 = vector.load %arg1[%c0_25, %c640] : memref<64x768xf32, #tpu.memory_space<vmem>>, vector<64x128xf32>
    %cst_26 = arith.constant dense<0.000000e+00> : vector<8x128xf32>
    %105 = tpu.matmul %103, %104, %cst_26 {dimension_numbers = #tpu.dot_dimension_numbers<[1], [0], [0], [1], [0, 0, 1, 1], [], []>, precision = #tpu.contract_precision<fp32>} : vector<8x64xf32>, vector<64x128xf32>, vector<8x128xf32> -> vector<8x128xf32>
    %106 = vector.extract_strided_slice %1 {offsets = [5, 0], sizes = [1, 128], strides = [1, 1]} : vector<16x128xf32> to vector<1x128xf32>
    %107 = vector.broadcast %106 : vector<1x128xf32> to vector<8x128xf32>
    %108 = arith.addf %105, %107 : vector<8x128xf32>
    %109 = vector.extract_strided_slice %108 {offsets = [0, 0], sizes = [8, 32], strides = [1, 1]} : vector<8x128xf32> to vector<8x32xf32>
    %110 = vector.extract_strided_slice %108 {offsets = [0, 96], sizes = [8, 32], strides = [1, 1]} : vector<8x128xf32> to vector<8x32xf32>
    %111 = tpu.concatenate %109, %79, %86, %110 in 1 : vector<8x32xf32>, vector<8x32xf32>, vector<8x32xf32>, vector<8x32xf32> -> vector<8x128xf32>
    %c0_27 = arith.constant 0 : index
    %c0_28 = arith.constant 0 : index
    %112 = vector.load %arg3[%c0_27, %c0_28] : memref<8x128xf32, #tpu.memory_space<vmem>>, vector<8x128xf32>
    tpu.vector_store %arg3[%c0_27, %c0_28], %111 {strides = array<i32>} : memref<8x128xf32, #tpu.memory_space<vmem>>, vector<8x128xf32>,
    return
  }
}

</mosaic_0001>

<bundles_post_ra>
// kernel: tpu_custom_call.1
= control target key start
LH: loop header
LB: loop body
LE: loop exit
PB: predicated region body
PF: predicated region fallthrough
CT: control target
= control target key end

     0   :  { %8 = vsyncpa [#allocation3], 0  ;;  %s5878_s0 = inlined_call_operand.hbm [shape: f32[8,128], index: 0, kind: input, shape index: {}]   ;;  %s5879_s1 = inlined_call_operand.hbm [shape: f32[64,768], index: 1, kind: input, shape index: {}]   ;;  %s5880_s2 = inlined_call_operand.hbm [shape: f32[16,128], index: 2, kind: input, shape index: {}]   ;;  %s5881_s3 = inlined_call_operand.hbm [shape: f32[8,128], index: 3, kind: output, shape index: {}]  }
   0x1   :  { %9 = vsyncpa [#allocation6], 0 }
   0x2   :  { %10 = vsyncpa [#allocation4], 0  ;;  %s4624_s12 = smov [#allocation5]  }
   0x3   :  { %s26_s13 = sshll.u32 %s4624_s12, 4  ;;  %s27_s13 = int_to_ptr.vmem [resolvable:$true] %s26_s13 }
   0x4   :  { %s4546_s14 = scalar_lea.vmem %s27_s13, 6144  ;;  %p4551_p1 = scmp.lt.s32.totalorder %s27_s13, %s27_s13 }
   0x5   :  { %p4547_p0 = scmp.ne.s32.totalorder %s27_s13, %s4546_s14  ;;  %p4552_p2 = scmp.lt.s32.totalorder %s4546_s14, %s4546_s14 }
   0x7   :  { %p4553_p3 = por %p4552_p2, %p4551_p1 }
   0x9   :  { %p4554_p4 = pnand %p4553_p3, %p4547_p0 }
   0xb   :  { %4557 = shalt.err (!%p4554_p4)
}
   0xc   :  { %s4625_s15 = smov 768   ;;  %s4626_s16 = smov 48  }
   0xd   :  { %32 = dma.hbm_to_vmem [thread:$0]  %s5879_s1, 6144, %s27_s13, [#allocation6], %s4625_s15, %s4625_s15, %s4626_s16  }
   0xe   :  { %s4627_s19 = smov [#allocation2]   ;;  %s4628_s21 = smov [#allocation7]  }
   0xf   :  { %s17_s20 = sshll.u32 %s4627_s19, 4  ;;  %s38_s22 = sshll.u32 %s4628_s21, 4  ;;  %s18_s20 = int_to_ptr.vmem [resolvable:$true] %s17_s20  ;;  %s39_s22 = int_to_ptr.vmem [resolvable:$true] %s38_s22 }
  0x10   :  { %s4566_s23 = scalar_lea.vmem %s18_s20, 128  ;;  %p4571_p6 = scmp.lt.s32.totalorder %s18_s20, %s18_s20 }
  0x11   :  { %p4567_p5 = scmp.ne.s32.totalorder %s18_s20, %s4566_s23  ;;  %p4572_p7 = scmp.lt.s32.totalorder %s4566_s23, %s4566_s23 }
  0x13   :  { %p4573_p8 = por %p4572_p7, %p4571_p6 }
  0x15   :  { %p4574_p9 = pnand %p4573_p8, %p4567_p5 }
  0x17   :  { %4577 = shalt.err (!%p4574_p9)
}
  0x18   :  { %20 = dma.hbm_to_vmem [thread:$0]  %s5878_s0, 128, %s18_s20, [#allocation3]  }
  0x19   :  { %s4586_s26 = scalar_lea.vmem %s39_s22, 256  ;;  %p4591_p11 = scmp.lt.s32.totalorder %s39_s22, %s39_s22 }
  0x1a   :  { %p4587_p10 = scmp.ne.s32.totalorder %s39_s22, %s4586_s26  ;;  %p4592_p12 = scmp.lt.s32.totalorder %s4586_s26, %s4586_s26 }
  0x1c   :  { %p4593_p13 = por %p4592_p12, %p4591_p11 }
  0x1e   :  { %p4594_p0 = pnand %p4593_p13, %p4587_p10 }
  0x20   :  { %4597 = shalt.err (!%p4594_p0)
}
  0x21   :  { %s4629_s1 = smov 128   ;;  %s4630_s27 = smov 8  }
  0x22   :  { %44 = dma.hbm_to_vmem [thread:$0]  %s5880_s2, 256, %s39_s22, [#allocation6], %s4629_s1, %s4629_s1, %s4630_s27  }
  0x23   :  { %4618 = dma.done.wait [#allocation3], 128  }
  0x24   :  { %4619 = vsyncadd [#allocation3], 4294967168 }
  0x25   :  { %4620 = dma.done.wait [#allocation6], 6400  }
  0x26   :  { %4621 = vsyncadd [#allocation6], 4294960896  ;;  %v4631_v0 = vmov 0.0   ;;  %vm4632_vm0 = vmmov 0   ;;  %v4672_v1 = vld [vmem:[#allocation2] sm:$0xff]  ;;  %v64_v2 = vld [vmem:[#allocation5 + $0x150] sm:$0xff]  ;;  %v65_v61 = vlaneseq }
  0x27   :  { %3842 = vmatprep.subr.mxu1 %v4631_v0  ;;  %3823 = vmatprep.subr.mxu0 %v4631_v0  ;;  %v63_v3 = vld [vmem:[#allocation5 + $0x120] sm:$0xff]  ;;  %s4633_s0 = smov 64   ;;  %v4676_v4 = vand.u32 4294901760, %v64_v2  ;;  %v62_v6 = vld [vmem:[#allocation5 + $0xf0] sm:$0xff]  ;;  %vm72_vm1 = vcmask 523264   ;;  %s4634_s2 = smov 96  }
  0x28   :  { %3858 = vmatprep.mubr.msk.f32.mxu1 %vm4632_vm0, %v4631_v0  ;;  %3839 = vmatprep.mubr.msk.f32.mxu0 %vm4632_vm0, %v4631_v0  ;;  %v4678_v5 = vand.u32 4294901760, %v63_v3  ;;  %v61_v7 = vld [vmem:[#allocation5 + $0xc0] sm:$0xff]  ;;  %v60_v8 = vld [vmem:[#allocation5 + $0x90] sm:$0xff]  ;;  %v4680_v9 = vand.u32 4294901760, %v62_v6  ;;  %vm627_vm2 = vcmask 261120   ;;  %s4635_s30 = smov 32  }
  0x29   :  { %70 = vrot.lane.b32.xlu0 %v4672_v1, %s4633_s0  ;;  %v4682_v10 = vand.u32 4294901760, %v61_v7  ;;  %v4684_v11 = vand.u32 4294901760, %v60_v8  ;;  %v59_v12 = vld [vmem:[#allocation5 + $0x60] sm:$0xff]  ;;  %v58_v13 = vld [vmem:[#allocation5 + $0x30] sm:$0xff]  ;;  %v4687_v15 = vsub.f32 %v64_v2, %v4676_v4  ;;  %3824 = vmatpush3.msra.mxu0 %v4676_v4  ;;  %v4863_v2 = vshrl.u32 %v65_v61, 7  ;;  %s4636_s4 = smov [#allocation8]  }
  0x2a   :  { %v57_v14 = vld [vmem:[#allocation5] sm:$0xff]  ;;  %v4690_v16 = vsub.f32 %v63_v3, %v4678_v5  ;;  %v4693_v17 = vand.u32 4294901760, %v59_v12  ;;  %v4695_v18 = vand.u32 4294901760, %v58_v13  ;;  %v4698_v19 = vsub.f32 %v62_v6, %v4680_v9  ;;  %3825 = vmatprep.subr.mxu0 %v4631_v0  ;;  %s3486_s5 = sshll.u32 %s4636_s4, 4  ;;  %s3487_s5 = int_to_ptr.vmem [resolvable:$true] %s3486_s5 }
  0x2b   :  { %v4701_v20 = vsub.f32 %v61_v7, %v4682_v10  ;;  %v4704_v21 = vsub.f32 %v60_v8, %v4684_v11  ;;  %v4707_v22 = vand.u32 4294901760, %v57_v14  ;;  %v177_v23 = vand.u32 4294901760, %v4687_v15  ;;  %3826 = vmatpush3.msra.mxu0 %v4678_v5  ;;  %s4598_s6 = scalar_lea.vmem %s3487_s5, 128  ;;  %p4603_p2 = scmp.lt.s32.totalorder %s3487_s5, %s3487_s5 }
  0x2c   :  { %v184_v24 = vand.u32 4294901760, %v4690_v16  ;;  %v4713_v25 = vsub.f32 %v59_v12, %v4693_v17  ;;  %v191_v26 = vand.u32 4294901760, %v4698_v19  ;;  %3827 = vmatprep.subr.mxu0 %v4631_v0  ;;  %v4727_v31 = vsub.f32 %v58_v13, %v4695_v18  ;;  %p4599_p1 = scmp.ne.s32.totalorder %s3487_s5, %s4598_s6  ;;  %p4604_p3 = scmp.lt.s32.totalorder %s4598_s6, %s4598_s6 }
  0x2d   :  { %v198_v27 = vand.u32 4294901760, %v4701_v20  ;;  %v178_v28 = vsub.f32 %v4687_v15, %v177_v23  ;;  %v205_v30 = vand.u32 4294901760, %v4704_v21  ;;  %3828 = vmatpush3.msra.mxu0 %v4680_v9  ;;  %v4734_v33 = vsub.f32 %v57_v14, %v4707_v22 }
  0x2e   :  { %v185_v29 = vsub.f32 %v4690_v16, %v184_v24  ;;  %v192_v32 = vsub.f32 %v4698_v19, %v191_v26  ;;  %3829 = vmatprep.subr.mxu0 %v4631_v0  ;;  %v212_v37 = vand.u32 4294901760, %v4713_v25  ;;  %v219_v40 = vand.u32 4294901760, %v4727_v31  ;;  %p4605_p4 = por %p4604_p3, %p4603_p2 }
  0x2f   :  { %v179_v34 = vand.u32 4294901760, %v178_v28  ;;  %v199_v36 = vsub.f32 %v4701_v20, %v198_v27  ;;  %3830 = vmatpush3.msra.mxu0 %v4682_v10  ;;  %v206_v39 = vsub.f32 %v4704_v21, %v205_v30  ;;  %v226_v43 = vand.u32 4294901760, %v4734_v33 }
  0x30   :  { %v186_v35 = vand.u32 4294901760, %v185_v29  ;;  %3831 = vmatprep.subr.mxu0 %v4631_v0  ;;  %v193_v38 = vand.u32 4294901760, %v192_v32  ;;  %v213_v42 = vsub.f32 %v4713_v25, %v212_v37  ;;  %v220_v45 = vsub.f32 %v4727_v31, %v219_v40  ;;  %v632_v32 = vld [vmem:[#allocation5 + $0x98] sm:$0xff]  ;;  %p4606_p5 = pnand %p4605_p4, %p4599_p1 }
  0x31   :  { %3843 = vmatpush3.msra.mxu1 %v179_v34  ;;  %3832 = vmatpush3.msra.mxu0 %v4684_v11  ;;  %v200_v41 = vand.u32 4294901760, %v199_v36  ;;  %v207_v44 = vand.u32 4294901760, %v206_v39  ;;  %v227_v47 = vsub.f32 %v4734_v33, %v226_v43  ;;  %v67_v3 = vsub.s32 0, %v4863_v2  ;;  %v630_v34 = vld [vmem:[#allocation5 + $0x38] sm:$0xff] }
  0x32   :  { %3844 = vmatprep.subr.mxu1 %v4631_v0  ;;  %3833 = vmatprep.subr.mxu0 %v4631_v0  ;;  %v214_v46 = vand.u32 4294901760, %v213_v42  ;;  %v221_v48 = vand.u32 4294901760, %v220_v45  ;;  %vm3477_vm3 = vcmask 785408  }
  0x33   :  { %3845 = vmatpush3.msra.mxu1 %v186_v35  ;;  %3834 = vmatpush3.msra.mxu0 %v4693_v17  ;;  %v228_v49 = vand.u32 4294901760, %v227_v47  ;;  %v4904_v35 = vand.u32 4294901760, %v632_v32 }
  0x34   :  { %3846 = vmatprep.subr.mxu1 %v4631_v0  ;;  %3835 = vmatprep.subr.mxu0 %v4631_v0 }
  0x35   :  { %3847 = vmatpush3.msra.mxu1 %v193_v38  ;;  %3836 = vmatpush3.msra.mxu0 %v4695_v18  ;;  %v629_v38 = vld [vmem:[#allocation5 + $0x8] sm:$0xff] }
  0x36   :  { %3848 = vmatprep.subr.mxu1 %v4631_v0  ;;  %3837 = vmatprep.subr.mxu0 %v4631_v0 }
  0x37   :  { %3849 = vmatpush3.msra.mxu1 %v200_v41  ;;  %3838 = vmatpush3.msra.mxu0 %v4707_v22 }
  0x38   :  { %3850 = vmatprep.subr.mxu1 %v4631_v0  ;;  %3861 = vmatprep.subr.mxu0 %v4631_v0 }
  0x39   :  { %3851 = vmatpush3.msra.mxu1 %v207_v44 }
  0x3a   :  { %3852 = vmatprep.subr.mxu1 %v4631_v0 }
  0x3b   :  { %3853 = vmatpush3.msra.mxu1 %v214_v46  ;;  %v4928_v46 = vand.u32 4294901760, %v629_v38 }
  0x3c   :  { %3854 = vmatprep.subr.mxu1 %v4631_v0 }
  0x3d   :  { %3855 = vmatpush3.msra.mxu1 %v221_v48 }
  0x3e   :  { %3856 = vmatprep.subr.mxu1 %v4631_v0 }
  0x3f   :  { %3857 = vmatpush3.msra.mxu1 %v228_v49 }
  0x40   :  { %3880 = vmatprep.subr.mxu1 %v4631_v0 }
  0x9b   :  { %v71_v50 = vpop.permute.xlu0 %70 }
  0x9c   :  { %v73_v51 = vsel %vm72_vm1, %v71_v50, 0 }
  0x9d   :  { %v4773_v52 = vand.u32 4294901760, %v73_v51 }
  0x9f   :  { %v149_v53 = vsub.f32 %v73_v51, %v4773_v52  ;;  %3859 = vmatmul.mubr.f32.vlgmr.msra.gmra.mxu1 %v4773_v52 }
  0xa0   :  { %3881 = vmatpush3.msra.mxu1 %v4676_v4  ;;  %3896 = vmatprep.mubr.msk.f32.mxu1 %vm4632_vm0, %v4631_v0 }
  0xa1   :  { %v150_v54 = vand.u32 4294901760, %v149_v53  ;;  %3882 = vmatprep.subr.mxu1 %v4631_v0 }
  0xa2   :  { %3883 = vmatpush3.msra.mxu1 %v4678_v5 }
  0xa3   :  { %3884 = vmatprep.subr.mxu1 %v4631_v0  ;;  %v151_v55 = vsub.f32 %v149_v53, %v150_v54 }
  0xa4   :  { %3885 = vmatpush3.msra.mxu1 %v4680_v9 }
  0xa5   :  { %3886 = vmatprep.subr.mxu1 %v4631_v0  ;;  %v152_v56 = vand.u32 4294901760, %v151_v55 }
  0xa6   :  { %3887 = vmatpush3.msra.mxu1 %v4682_v10 }
  0xa7   :  { %3888 = vmatprep.subr.mxu1 %v4631_v0  ;;  %3840 = vmatmul.mubr.f32.vlgmr.msra.gmra.mxu0 %v152_v56 }
  0xa8   :  { %3862 = vmatpush3.msra.mxu0 %v4687_v15  ;;  %3889 = vmatpush3.msra.mxu1 %v4684_v11 }
  0xa9   :  { %3863 = vmatprep.subr.mxu0 %v4631_v0  ;;  %3890 = vmatprep.subr.mxu1 %v4631_v0 }
  0xaa   :  { %3864 = vmatpush3.msra.mxu0 %v4690_v16  ;;  %3891 = vmatpush3.msra.mxu1 %v4693_v17 }
  0xab   :  { %3865 = vmatprep.subr.mxu0 %v4631_v0  ;;  %3892 = vmatprep.subr.mxu1 %v4631_v0 }
  0xac   :  { %3866 = vmatpush3.msra.mxu0 %v4698_v19  ;;  %3893 = vmatpush3.msra.mxu1 %v4695_v18 }
  0xad   :  { %3867 = vmatprep.subr.mxu0 %v4631_v0  ;;  %3894 = vmatprep.subr.mxu1 %v4631_v0 }
  0xae   :  { %3868 = vmatpush3.msra.mxu0 %v4701_v20  ;;  %3895 = vmatpush3.msra.mxu1 %v4707_v22  ;;  %v635_v20 = vld [vmem:[#allocation5 + $0x128] sm:$0xff] }
  0xaf   :  { %3869 = vmatprep.subr.mxu0 %v4631_v0  ;;  %3897 = vmatmul.mubr.f32.vlgmr.msra.gmra.mxu1 %v150_v54 }
  0xb0   :  { %3918 = vmatprep.subr.mxu1 %v4631_v0  ;;  %3870 = vmatpush3.msra.mxu0 %v4704_v21 }
  0xb1   :  { %3919 = vmatpush3.msra.mxu1 %v4676_v4  ;;  %3871 = vmatprep.subr.mxu0 %v4631_v0  ;;  %v4866_v4 = vld [vmem:[#allocation7] sm:$0xff] }
  0xb2   :  { %3920 = vmatprep.subr.mxu1 %v4631_v0  ;;  %3872 = vmatpush3.msra.mxu0 %v4713_v25  ;;  %v68_v6 = vrot.slane %v4866_v4, %v67_v3 }
  0xb3   :  { %3921 = vmatpush3.msra.mxu1 %v4678_v5  ;;  %3873 = vmatprep.subr.mxu0 %v4631_v0 }
  0xb4   :  { %3922 = vmatprep.subr.mxu1 %v4631_v0  ;;  %3874 = vmatpush3.msra.mxu0 %v4727_v31 }
  0xb5   :  { %3923 = vmatpush3.msra.mxu1 %v4680_v9  ;;  %3875 = vmatprep.subr.mxu0 %v4631_v0 }
  0xb6   :  { %3924 = vmatprep.subr.mxu1 %v4631_v0  ;;  %3876 = vmatpush3.msra.mxu0 %v4734_v33  ;;  %v631_v33 = vld [vmem:[#allocation5 + $0x68] sm:$0xff] }
  0xb7   :  { %3877 = vmatprep.mubr.msk.f32.mxu0 %vm4632_vm0, %v4631_v0  ;;  %3925 = vmatpush3.msra.mxu1 %v4682_v10  ;;  %v4906_v36 = vand.u32 4294901760, %v631_v33 }
  0xb8   :  { %3878 = vmatmul.mubr.f32.vlgmr.msra.gmra.mxu0 %v149_v53  ;;  %3899 = vmatprep.subr.mxu0 %v4631_v0  ;;  %v4941_v53 = vsub.f32 %v629_v38, %v4928_v46 }
  0xb9   :  { %3926 = vmatprep.subr.mxu1 %v4631_v0  ;;  %3900 = vmatpush3.msra.mxu0 %v177_v23  ;;  %v634_v23 = vld [vmem:[#allocation5 + $0xf8] sm:$0xff]  ;;  %v4923_v44 = vsub.f32 %v631_v33, %v4906_v36 }
  0xba   :  { %3927 = vmatpush3.msra.mxu1 %v4684_v11  ;;  %3901 = vmatprep.subr.mxu0 %v4631_v0 }
  0xbb   :  { %3928 = vmatprep.subr.mxu1 %v4631_v0  ;;  %3902 = vmatpush3.msra.mxu0 %v184_v24  ;;  %v781_v51 = vand.u32 4294901760, %v4923_v44 }
  0xbc   :  { %3929 = vmatpush3.msra.mxu1 %v4693_v17  ;;  %3903 = vmatprep.subr.mxu0 %v4631_v0 }
  0xbd   :  { %3930 = vmatprep.subr.mxu1 %v4631_v0  ;;  %3904 = vmatpush3.msra.mxu0 %v191_v26  ;;  %v4890_v26 = vand.u32 4294901760, %v634_v23 }
  0xbe   :  { %3931 = vmatpush3.msra.mxu1 %v4695_v18  ;;  %3905 = vmatprep.subr.mxu0 %v4631_v0  ;;  %v636_v18 = vld [vmem:[#allocation5 + $0x158] sm:$0xff] }
  0xbf   :  { %3932 = vmatprep.subr.mxu1 %v4631_v0  ;;  %3906 = vmatpush3.msra.mxu0 %v198_v27  ;;  %v4876_v19 = vand.u32 4294901760, %v636_v18  ;;  %v633_v27 = vld [vmem:[#allocation5 + $0xc8] sm:$0xff] }
  0xc0   :  { %3933 = vmatpush3.msra.mxu1 %v4707_v22  ;;  %3934 = vmatprep.mubr.msk.f32.mxu1 %vm4632_vm0, %v4631_v0  ;;  %v4881_v22 = vand.u32 4294901760, %v635_v20  ;;  %v4901_v31 = vand.u32 4294901760, %v633_v27 }
  0xc1   :  { %3907 = vmatprep.subr.mxu0 %v4631_v0  ;;  %3935 = vmatmul.mubr.f32.vlgmr.msra.gmra.mxu1 %v4773_v52  ;;  %v4879_v21 = vsub.f32 %v636_v18, %v4876_v19 }
  0xc2   :  { %3908 = vmatpush3.msra.mxu0 %v205_v30  ;;  %3915 = vmatprep.mubr.msk.f32.mxu0 %vm4632_vm0, %v4631_v0  ;;  %v4888_v25 = vsub.f32 %v635_v20, %v4881_v22  ;;  %v4899_v30 = vsub.f32 %v634_v23, %v4890_v26  ;;  %v4916_v42 = vsub.f32 %v633_v27, %v4901_v31 }
  0xc3   :  { %3909 = vmatprep.subr.mxu0 %v4631_v0  ;;  %3956 = vmatprep.subr.mxu1 %v4631_v0  ;;  %v746_v24 = vand.u32 4294901760, %v4879_v21 }
  0xc4   :  { %3910 = vmatpush3.msra.mxu0 %v212_v37  ;;  %3972 = vmatprep.mubr.msk.f32.mxu1 %vm4632_vm0, %v4631_v0  ;;  %v753_v29 = vand.u32 4294901760, %v4888_v25  ;;  %v4908_v37 = vand.u32 4294901760, %v630_v34  ;;  %v760_v41 = vand.u32 4294901760, %v4899_v30  ;;  %v767_v49 = vand.u32 4294901760, %v4916_v42 }
  0xc5   :  { %3911 = vmatprep.subr.mxu0 %v4631_v0  ;;  %v747_v28 = vsub.f32 %v4879_v21, %v746_v24 }
  0xc6   :  { %3912 = vmatpush3.msra.mxu0 %v219_v40  ;;  %v754_v40 = vsub.f32 %v4888_v25, %v753_v29  ;;  %v4926_v45 = vsub.f32 %v630_v34, %v4908_v37  ;;  %v761_v48 = vsub.f32 %v4899_v30, %v760_v41  ;;  %v768_v55 = vsub.f32 %v4916_v42, %v767_v49 }
  0xc7   :  { %3913 = vmatprep.subr.mxu0 %v4631_v0  ;;  %v748_v39 = vand.u32 4294901760, %v747_v28  ;;  %v1203_v28 = vld [vmem:[#allocation5 + $0xd0] sm:$0xff] }
  0xc8   :  { %3914 = vmatpush3.msra.mxu0 %v226_v43  ;;  %v4920_v43 = vsub.f32 %v632_v32, %v4904_v35  ;;  %v755_v47 = vand.u32 4294901760, %v754_v40  ;;  %v762_v54 = vand.u32 4294901760, %v761_v48 }
  0xc9   :  { %3916 = vmatmul.mubr.f32.vlgmr.msra.gmra.mxu0 %v4773_v52  ;;  %3937 = vmatprep.subr.mxu0 %v4631_v0  ;;  %v788_v52 = vand.u32 4294901760, %v4926_v45 }
  0xca   :  { %3953 = vmatprep.mubr.msk.f32.mxu0 %vm4632_vm0, %v4631_v0  ;;  %3938 = vmatpush3.msra.mxu0 %v4876_v19  ;;  %v774_v50 = vand.u32 4294901760, %v4920_v43 }
  0xcb   :  { %3939 = vmatprep.subr.mxu0 %v4631_v0  ;;  %3957 = vmatpush3.msra.mxu1 %v748_v39 }
  0xcc   :  { %3940 = vmatpush3.msra.mxu0 %v4881_v22  ;;  %3958 = vmatprep.subr.mxu1 %v4631_v0  ;;  %v775_v56 = vsub.f32 %v4920_v43, %v774_v50 }
  0xcd   :  { %3941 = vmatprep.subr.mxu0 %v4631_v0  ;;  %3959 = vmatpush3.msra.mxu1 %v755_v47 }
  0xce   :  { %3942 = vmatpush3.msra.mxu0 %v4890_v26  ;;  %3960 = vmatprep.subr.mxu1 %v4631_v0  ;;  %v776_v61 = vand.u32 4294901760, %v775_v56 }
  0xcf   :  { %3943 = vmatprep.subr.mxu0 %v4631_v0  ;;  %3961 = vmatpush3.msra.mxu1 %v762_v54 }
  0xd0   :  { %3944 = vmatpush3.msra.mxu0 %v4901_v31  ;;  %3962 = vmatprep.subr.mxu1 %v4631_v0 }
  0xd1   :  { %3945 = vmatprep.subr.mxu0 %v4631_v0 }
  0xd2   :  { %3946 = vmatpush3.msra.mxu0 %v4904_v35 }
  0xd3   :  { %3947 = vmatprep.subr.mxu0 %v4631_v0 }
  0xd4   :  { %3948 = vmatpush3.msra.mxu0 %v4906_v36 }
  0xd5   :  { %3949 = vmatprep.subr.mxu0 %v4631_v0 }
  0xd6   :  { %3950 = vmatpush3.msra.mxu0 %v4908_v37 }
  0xd7   :  { %3951 = vmatprep.subr.mxu0 %v4631_v0 }
  0xd8   :  { %3952 = vmatpush3.msra.mxu0 %v4928_v46 }
  0xd9   :  { %3975 = vmatprep.subr.mxu0 %v4631_v0 }
 0x15f   :  { %v265_v57 = vpop.f32.mrf.mxu1 }
 0x161   :  { %v3860_v58 = vpop.f32.mrf.mxu1 }
 0x162   :  { %v795_v58 = vand.u32 4294901760, %v4941_v53 }
 0x167   :  { %v154_v59 = vpop.f32.mrf.mxu0 }
 0x168   :  { %v155_v8 = vadd.f32 %v154_v59, %v68_v6  ;;  %v769_v59 = vand.u32 4294901760, %v768_v55 }
 0x169   :  { %v3841_v60 = vpop.f32.mrf.mxu0 }
 0x16a   :  { %v266_v10 = vadd.f32 %v265_v57, %v155_v8  ;;  %v782_v57 = vsub.f32 %v4923_v44, %v781_v51  ;;  %v789_v60 = vsub.f32 %v4926_v45, %v788_v52  ;;  %3963 = vmatpush3.msra.mxu1 %v769_v59 }
 0x16b   :  { %3964 = vmatprep.subr.mxu1 %v4631_v0 }
 0x16c   :  { %3965 = vmatpush3.msra.mxu1 %v776_v61 }
 0x16d   :  { %3966 = vmatprep.subr.mxu1 %v4631_v0 }
 0x16f   :  { %v434_v62 = vpop.f32.mrf.mxu1 }
 0x171   :  { %v3898_v63 = vpop.f32.mrf.mxu1 }
 0x172   :  { %v796_v63 = vsub.f32 %v4941_v53, %v795_v58 }
 0x174   :  { %v797_v6 = vand.u32 4294901760, %v796_v63 }
 0x178   :  { %v353_v5 = vpop.f32.mrf.mxu0 }
 0x179   :  { %v354_v12 = vadd.f32 %v353_v5, %v266_v10  ;;  %v790_v5 = vand.u32 4294901760, %v789_v60 }
 0x17a   :  { %v3879_v7 = vpop.f32.mrf.mxu0 }
 0x17b   :  { %v435_v13 = vadd.f32 %v434_v62, %v354_v12  ;;  %v783_v62 = vand.u32 4294901760, %v782_v57 }
 0x17d   :  { %3967 = vmatpush3.msra.mxu1 %v783_v62 }
 0x17e   :  { %3968 = vmatprep.subr.mxu1 %v4631_v0 }
 0x17f   :  { %3969 = vmatpush3.msra.mxu1 %v790_v5  ;;  %v639_v5 = vsub.s32 1, %v4863_v2 }
 0x180   :  { %3970 = vmatprep.subr.mxu1 %v4631_v0 }
 0x181   :  { %v608_v9 = vpop.f32.mrf.mxu1  ;;  %3971 = vmatpush3.msra.mxu1 %v797_v6 }
 0x182   :  { %3994 = vmatprep.subr.mxu1 %v4631_v0 }
 0x183   :  { %v3936_v11 = vpop.f32.mrf.mxu1 }
 0x189   :  { %v529_v14 = vpop.f32.mrf.mxu0 }
 0x18a   :  { %v530_v15 = vadd.f32 %v529_v14, %v435_v13 }
 0x18b   :  { %v3917_v16 = vpop.f32.mrf.mxu0 }
 0x18c   :  { %v4871_v17 = vadd.f32 %v608_v9, %v530_v15 }
 0x18e   :  { %623 = vrot.lane.b32.xlu1 %v4871_v17, %s4633_s0  ;;  %613 = vrot.lane.b32.xlu0 %v4871_v17, %s4634_s2 }
 0x192   :  { %1189 = vrot.lane.b32.xlu1 %v4672_v1, %s4634_s2 }
 0x200   :  { %v614_v7 = vpop.permute.xlu0 %613  ;;  %v624_v13 = vpop.permute.xlu1 %623 }
 0x201   :  { %v616_v8 = vmul.f32 %v614_v7, %v4871_v17  ;;  %v640_v7 = vrot.slane %v4866_v4, %v639_v5 }
 0x203   :  { %v3496_v9 = vmul.f32 -1.442695, %v616_v8 }
 0x205   :  { %4520 = vpow2.f32 %v3496_v9 }
 0x212   :  { %v4521_v10 = vpop.eup %4520 }
 0x213   :  { %v620_v11 = vadd.f32 1.0, %v4521_v10 }
 0x215   :  { %4522 = vrcp.f32 %v620_v11 }
 0x222   :  { %v4523_v12 = vpop.eup %4522 }
 0x223   :  { %v4974_v14 = vmul.f32 %v4523_v12, %v624_v13 }
 0x225   :  { %v628_v15 = vsel %vm627_vm2, %v4974_v14, %v4672_v1 }
 0x226   :  { %v642_v16 = vsel %vm72_vm1, %v628_v15, 0 }
 0x227   :  { %v4980_v18 = vand.u32 4294901760, %v642_v16 }
 0x229   :  { %v718_v17 = vsub.f32 %v642_v16, %v4980_v18  ;;  %3973 = vmatmul.mubr.f32.vlgmr.msra.gmra.mxu1 %v4980_v18 }
 0x22a   :  { %3995 = vmatpush3.msra.mxu1 %v4876_v19  ;;  %4010 = vmatprep.mubr.msk.f32.mxu1 %vm4632_vm0, %v4631_v0 }
 0x22b   :  { %3996 = vmatprep.subr.mxu1 %v4631_v0  ;;  %v719_v20 = vand.u32 4294901760, %v718_v17 }
 0x22c   :  { %3997 = vmatpush3.msra.mxu1 %v4881_v22 }
 0x22d   :  { %3998 = vmatprep.subr.mxu1 %v4631_v0  ;;  %v720_v23 = vsub.f32 %v718_v17, %v719_v20 }
 0x22e   :  { %3999 = vmatpush3.msra.mxu1 %v4890_v26 }
 0x22f   :  { %4000 = vmatprep.subr.mxu1 %v4631_v0  ;;  %v721_v27 = vand.u32 4294901760, %v720_v23 }
 0x230   :  { %4001 = vmatpush3.msra.mxu1 %v4901_v31 }
 0x231   :  { %4002 = vmatprep.subr.mxu1 %v4631_v0  ;;  %3954 = vmatmul.mubr.f32.vlgmr.msra.gmra.mxu0 %v721_v27  ;;  %v1200_v27 = vld [vmem:[#allocation5 + $0x40] sm:$0xff] }
 0x232   :  { %3976 = vmatpush3.msra.mxu0 %v4879_v21  ;;  %4003 = vmatpush3.msra.mxu1 %v4904_v35  ;;  %v1205_v21 = vld [vmem:[#allocation5 + $0x130] sm:$0xff] }
 0x233   :  { %3977 = vmatprep.subr.mxu0 %v4631_v0  ;;  %4004 = vmatprep.subr.mxu1 %v4631_v0 }
 0x234   :  { %3978 = vmatpush3.msra.mxu0 %v4888_v25  ;;  %4005 = vmatpush3.msra.mxu1 %v4906_v36  ;;  %v5072_v25 = vand.u32 4294901760, %v1205_v21 }
 0x235   :  { %3979 = vmatprep.subr.mxu0 %v4631_v0  ;;  %4006 = vmatprep.subr.mxu1 %v4631_v0 }
 0x236   :  { %3980 = vmatpush3.msra.mxu0 %v4899_v30  ;;  %4007 = vmatpush3.msra.mxu1 %v4908_v37  ;;  %v1201_v30 = vld [vmem:[#allocation5 + $0x70] sm:$0xff] }
 0x237   :  { %3981 = vmatprep.subr.mxu0 %v4631_v0  ;;  %4008 = vmatprep.subr.mxu1 %v4631_v0  ;;  %v5080_v33 = vand.u32 4294901760, %v1201_v30 }
 0x238   :  { %3982 = vmatpush3.msra.mxu0 %v4916_v42  ;;  %4009 = vmatpush3.msra.mxu1 %v4928_v46 }
 0x239   :  { %3983 = vmatprep.subr.mxu0 %v4631_v0  ;;  %4011 = vmatmul.mubr.f32.vlgmr.msra.gmra.mxu1 %v719_v20  ;;  %v5104_v42 = vsub.f32 %v1201_v30, %v5080_v33 }
 0x23a   :  { %4032 = vmatprep.subr.mxu1 %v4631_v0  ;;  %3984 = vmatpush3.msra.mxu0 %v4920_v43 }
 0x23b   :  { %4033 = vmatpush3.msra.mxu1 %v4876_v19  ;;  %3985 = vmatprep.subr.mxu0 %v4631_v0  ;;  %v1206_v19 = vld [vmem:[#allocation5 + $0x160] sm:$0xff] }
 0x23c   :  { %4034 = vmatprep.subr.mxu1 %v4631_v0  ;;  %3986 = vmatpush3.msra.mxu0 %v4923_v44 }
 0x23d   :  { %4035 = vmatpush3.msra.mxu1 %v4881_v22  ;;  %3987 = vmatprep.subr.mxu0 %v4631_v0  ;;  %v1204_v22 = vld [vmem:[#allocation5 + $0x100] sm:$0xff] }
 0x23e   :  { %4036 = vmatprep.subr.mxu1 %v4631_v0  ;;  %3988 = vmatpush3.msra.mxu0 %v4926_v45 }
 0x23f   :  { %4037 = vmatpush3.msra.mxu1 %v4890_v26  ;;  %3989 = vmatprep.subr.mxu0 %v4631_v0  ;;  %v5074_v26 = vand.u32 4294901760, %v1204_v22 }
 0x240   :  { %4038 = vmatprep.subr.mxu1 %v4631_v0  ;;  %3990 = vmatpush3.msra.mxu0 %v4941_v53 }
 0x241   :  { %3991 = vmatprep.mubr.msk.f32.mxu0 %vm4632_vm0, %v4631_v0  ;;  %4039 = vmatpush3.msra.mxu1 %v4901_v31  ;;  %v5076_v31 = vand.u32 4294901760, %v1203_v28 }
 0x242   :  { %3992 = vmatmul.mubr.f32.vlgmr.msra.gmra.mxu0 %v718_v17  ;;  %4013 = vmatprep.subr.mxu0 %v4631_v0 }
 0x243   :  { %4040 = vmatprep.subr.mxu1 %v4631_v0  ;;  %4014 = vmatpush3.msra.mxu0 %v746_v24  ;;  %v5070_v24 = vand.u32 4294901760, %v1206_v19 }
 0x244   :  { %4041 = vmatpush3.msra.mxu1 %v4904_v35  ;;  %4015 = vmatprep.subr.mxu0 %v4631_v0  ;;  %v5086_v35 = vsub.f32 %v1205_v21, %v5072_v25  ;;  %v5146_v21 = vand.u32 4294901760, %v1200_v27 }
 0x245   :  { %4042 = vmatprep.subr.mxu1 %v4631_v0  ;;  %4016 = vmatpush3.msra.mxu0 %v753_v29  ;;  %v1202_v29 = vld [vmem:[#allocation5 + $0xa0] sm:$0xff]  ;;  %v5083_v34 = vsub.f32 %v1206_v19, %v5070_v24 }
 0x246   :  { %4043 = vmatpush3.msra.mxu1 %v4906_v36  ;;  %4017 = vmatprep.subr.mxu0 %v4631_v0  ;;  %v5078_v32 = vand.u32 4294901760, %v1202_v29  ;;  %v5089_v36 = vsub.f32 %v1204_v22, %v5074_v26  ;;  %v1323_v40 = vand.u32 4294901760, %v5086_v35 }
 0x247   :  { %4044 = vmatprep.subr.mxu1 %v4631_v0  ;;  %4018 = vmatpush3.msra.mxu0 %v760_v41  ;;  %v1316_v39 = vand.u32 4294901760, %v5083_v34 }
 0x248   :  { %4045 = vmatpush3.msra.mxu1 %v4908_v37  ;;  %4019 = vmatprep.subr.mxu0 %v4631_v0  ;;  %v5093_v37 = vsub.f32 %v1203_v28, %v5076_v31  ;;  %v5096_v38 = vsub.f32 %v1202_v29, %v5078_v32  ;;  %v1330_v41 = vand.u32 4294901760, %v5089_v36  ;;  %v1324_v45 = vsub.f32 %v5086_v35, %v1323_v40  ;;  %v1199_v28 = vld [vmem:[#allocation5 + $0x10] sm:$0xff] }
 0x249   :  { %4046 = vmatprep.subr.mxu1 %v4631_v0  ;;  %4020 = vmatpush3.msra.mxu0 %v767_v49  ;;  %v1317_v44 = vsub.f32 %v5083_v34, %v1316_v39  ;;  %v5149_v29 = vsub.f32 %v1200_v27, %v5146_v21  ;;  %v5151_v30 = vand.u32 4294901760, %v1199_v28 }
 0x24a   :  { %4047 = vmatpush3.msra.mxu1 %v4928_v46  ;;  %4048 = vmatprep.mubr.msk.f32.mxu1 %vm4632_vm0, %v4631_v0  ;;  %v1337_v43 = vand.u32 4294901760, %v5093_v37  ;;  %v1331_v46 = vsub.f32 %v5089_v36, %v1330_v41  ;;  %v1344_v47 = vand.u32 4294901760, %v5096_v38  ;;  %v1325_v49 = vand.u32 4294901760, %v1324_v45 }
 0x24b   :  { %4021 = vmatprep.subr.mxu0 %v4631_v0  ;;  %4049 = vmatmul.mubr.f32.vlgmr.msra.gmra.mxu1 %v4980_v18  ;;  %v1318_v48 = vand.u32 4294901760, %v1317_v44  ;;  %v1358_v44 = vand.u32 4294901760, %v5149_v29  ;;  %v5157_v45 = vsub.f32 %v1199_v28, %v5151_v30 }
 0x24c   :  { %4022 = vmatpush3.msra.mxu0 %v774_v50  ;;  %4029 = vmatprep.mubr.msk.f32.mxu0 %vm4632_vm0, %v4631_v0  ;;  %v1338_v50 = vsub.f32 %v5093_v37, %v1337_v43  ;;  %v1345_v53 = vsub.f32 %v5096_v38, %v1344_v47 }
 0x24d   :  { %4023 = vmatprep.subr.mxu0 %v4631_v0  ;;  %4070 = vmatprep.subr.mxu1 %v4631_v0 }
 0x24e   :  { %4024 = vmatpush3.msra.mxu0 %v781_v51  ;;  %4086 = vmatprep.mubr.msk.f32.mxu1 %vm4632_vm0, %v4631_v0  ;;  %v1351_v51 = vand.u32 4294901760, %v5104_v42  ;;  %v1339_v55 = vand.u32 4294901760, %v1338_v50 }
 0x24f   :  { %4025 = vmatprep.subr.mxu0 %v4631_v0  ;;  %4071 = vmatpush3.msra.mxu1 %v1318_v48  ;;  %v1365_v48 = vand.u32 4294901760, %v5157_v45 }
 0x250   :  { %4026 = vmatpush3.msra.mxu0 %v788_v52  ;;  %v1332_v52 = vand.u32 4294901760, %v1331_v46  ;;  %4072 = vmatprep.subr.mxu1 %v4631_v0  ;;  %v1352_v56 = vsub.f32 %v5104_v42, %v1351_v51  ;;  %v1359_v46 = vsub.f32 %v5149_v29, %v1358_v44 }
 0x251   :  { %4027 = vmatprep.subr.mxu0 %v4631_v0  ;;  %4073 = vmatpush3.msra.mxu1 %v1325_v49  ;;  %v1366_v50 = vsub.f32 %v5157_v45, %v1365_v48 }
 0x252   :  { %4028 = vmatpush3.msra.mxu0 %v795_v58  ;;  %4074 = vmatprep.subr.mxu1 %v4631_v0  ;;  %v1346_v58 = vand.u32 4294901760, %v1345_v53  ;;  %v1353_v59 = vand.u32 4294901760, %v1352_v56  ;;  %v1360_v49 = vand.u32 4294901760, %v1359_v46 }
 0x253   :  { %4030 = vmatmul.mubr.f32.vlgmr.msra.gmra.mxu0 %v4980_v18  ;;  %4051 = vmatprep.subr.mxu0 %v4631_v0 }
 0x254   :  { %4067 = vmatprep.mubr.msk.f32.mxu0 %vm4632_vm0, %v4631_v0  ;;  %4052 = vmatpush3.msra.mxu0 %v5070_v24 }
 0x255   :  { %4053 = vmatprep.subr.mxu0 %v4631_v0  ;;  %4075 = vmatpush3.msra.mxu1 %v1332_v52  ;;  %v1367_v52 = vand.u32 4294901760, %v1366_v50  ;;  %v5284_v50 = vld [vmem:[#allocation7 + $0x8] sm:$0xff] }
 0x256   :  { %4054 = vmatpush3.msra.mxu0 %v5072_v25  ;;  %4076 = vmatprep.subr.mxu1 %v4631_v0 }
 0x257   :  { %4055 = vmatprep.subr.mxu0 %v4631_v0  ;;  %4077 = vmatpush3.msra.mxu1 %v1339_v55 }
 0x258   :  { %4056 = vmatpush3.msra.mxu0 %v5074_v26  ;;  %4078 = vmatprep.subr.mxu1 %v4631_v0 }
 0x259   :  { %4057 = vmatprep.subr.mxu0 %v4631_v0  ;;  %4079 = vmatpush3.msra.mxu1 %v1346_v58 }
 0x25a   :  { %4058 = vmatpush3.msra.mxu0 %v5076_v31  ;;  %4080 = vmatprep.subr.mxu1 %v4631_v0 }
 0x25b   :  { %4059 = vmatprep.subr.mxu0 %v4631_v0  ;;  %4081 = vmatpush3.msra.mxu1 %v1353_v59 }
 0x25c   :  { %4060 = vmatpush3.msra.mxu0 %v5078_v32  ;;  %4082 = vmatprep.subr.mxu1 %v4631_v0 }
 0x25d   :  { %4061 = vmatprep.subr.mxu0 %v4631_v0  ;;  %4083 = vmatpush3.msra.mxu1 %v1360_v49 }
 0x25e   :  { %4062 = vmatpush3.msra.mxu0 %v5080_v33  ;;  %4084 = vmatprep.subr.mxu1 %v4631_v0 }
 0x25f   :  { %4063 = vmatprep.subr.mxu0 %v4631_v0  ;;  %4085 = vmatpush3.msra.mxu1 %v1367_v52  ;;  %v1805_v52 = vsub.s32 3, %v4863_v2 }
 0x260   :  { %4064 = vmatpush3.msra.mxu0 %v5146_v21  ;;  %4108 = vmatprep.subr.mxu1 %v4631_v0 }
 0x261   :  { %4065 = vmatprep.subr.mxu0 %v4631_v0 }
 0x262   :  { %4066 = vmatpush3.msra.mxu0 %v5151_v30 }
 0x263   :  { %4089 = vmatprep.subr.mxu0 %v4631_v0 }
 0x2e9   :  { %v834_v54 = vpop.f32.mrf.mxu1 }
 0x2eb   :  { %v3974_v57 = vpop.f32.mrf.mxu1 }
 0x2f1   :  { %v723_v60 = vpop.f32.mrf.mxu0 }
 0x2f2   :  { %v724_v9 = vadd.f32 %v723_v60, %v640_v7 }
 0x2f3   :  { %v3955_v61 = vpop.f32.mrf.mxu0 }
 0x2f4   :  { %v835_v11 = vadd.f32 %v834_v54, %v724_v9  ;;  %v5170_v54 = vpop.permute.xlu1 %1189 }
 0x2f9   :  { %v1003_v62 = vpop.f32.mrf.mxu1 }
 0x2fb   :  { %v4012_v63 = vpop.f32.mrf.mxu1 }
 0x302   :  { %v922_v6 = vpop.f32.mrf.mxu0 }
 0x303   :  { %v923_v13 = vadd.f32 %v922_v6, %v835_v11 }
 0x304   :  { %v3993_v8 = vpop.f32.mrf.mxu0 }
 0x305   :  { %v1004_v15 = vadd.f32 %v1003_v62, %v923_v13 }
 0x30b   :  { %v1177_v10 = vpop.f32.mrf.mxu1 }
 0x30d   :  { %v4050_v12 = vpop.f32.mrf.mxu1 }
 0x313   :  { %v1098_v16 = vpop.f32.mrf.mxu0 }
 0x314   :  { %v1099_v18 = vadd.f32 %v1098_v16, %v1004_v15 }
 0x315   :  { %v4031_v17 = vpop.f32.mrf.mxu0 }
 0x316   :  { %v1178_v20 = vadd.f32 %v1177_v10, %v1099_v18  ;;  %v4536_v17 = vld [vmem:[#allocation2] sm:$0xff] }
 0x318   :  { %v3497_v23 = vmul.f32 -1.442695, %v1178_v20 }
 0x31a   :  { %4524 = vpow2.f32 %v3497_v23 }
 0x327   :  { %v4525_v19 = vpop.eup %4524 }
 0x328   :  { %v1184_v22 = vadd.f32 1.0, %v4525_v19 }
 0x32a   :  { %4526 = vrcp.f32 %v1184_v22 }
 0x337   :  { %v4527_v53 = vpop.eup %4526 }
 0x338   :  { %v1188_v55 = vsub.f32 1.0, %v4527_v53  ;;  %v1187_v56 = vmul.f32 %v4527_v53, %v4974_v14 }
 0x33a   :  { %v1192_v57 = vmul.f32 %v5170_v54, %v1188_v55 }
 0x33c   :  { %v5174_v58 = vadd.f32 %v1192_v57, %v1187_v56  ;;  %v1806_v56 = vrot.slane %v5284_v50, %v1805_v52 }
 0x33e   :  { %1195 = vrot.lane.b32.xlu0 %v5174_v58, %s4635_s30  ;;  %v1764_v59 = vsel %vm627_vm2, %v5174_v58, 0.0 }
 0x35d   :  { %1765 = vadd.xlane.f32.xlu0 %v1764_v59  ;;  %v1820_v59 = vld [vmem:[#allocation5 + $0x168] sm:$0xff] }
 0x3b0   :  { %v1196_v60 = vpop.permute.xlu0 %1195 }
 0x3b1   :  { %v1198_v61 = vsel %vm627_vm2, %v4672_v1, %v1196_v60  ;;  %v1819_v60 = vld [vmem:[#allocation5 + $0x138] sm:$0xff] }
 0x3b2   :  { %v1212_v62 = vsel %vm72_vm1, %v1198_v61, 0  ;;  %v1818_v61 = vld [vmem:[#allocation5 + $0x108] sm:$0xff] }
 0x3b3   :  { %v5183_v63 = vand.u32 4294901760, %v1212_v62 }
 0x3b5   :  { %v1288_v14 = vsub.f32 %v1212_v62, %v5183_v63  ;;  %4087 = vmatmul.mubr.f32.vlgmr.msra.gmra.mxu1 %v5183_v63  ;;  %v5295_v62 = vand.u32 4294901760, %v1820_v59 }
 0x3b6   :  { %4109 = vmatpush3.msra.mxu1 %v5070_v24  ;;  %4124 = vmatprep.mubr.msk.f32.mxu1 %vm4632_vm0, %v4631_v0 }
 0x3b7   :  { %v1289_v6 = vand.u32 4294901760, %v1288_v14  ;;  %4110 = vmatprep.subr.mxu1 %v4631_v0 }
 0x3b8   :  { %4111 = vmatpush3.msra.mxu1 %v5072_v25 }
 0x3b9   :  { %4112 = vmatprep.subr.mxu1 %v4631_v0  ;;  %v1290_v1 = vsub.f32 %v1288_v14, %v1289_v6 }
 0x3ba   :  { %4113 = vmatpush3.msra.mxu1 %v5074_v26 }
 0x3bb   :  { %4114 = vmatprep.subr.mxu1 %v4631_v0  ;;  %v1291_v7 = vand.u32 4294901760, %v1290_v1  ;;  %v1816_v1 = vld [vmem:[#allocation5 + $0xa8] sm:$0xff] }
 0x3bc   :  { %4115 = vmatpush3.msra.mxu1 %v5076_v31 }
 0x3bd   :  { %4116 = vmatprep.subr.mxu1 %v4631_v0  ;;  %4068 = vmatmul.mubr.f32.vlgmr.msra.gmra.mxu0 %v1291_v7  ;;  %v1815_v7 = vld [vmem:[#allocation5 + $0x78] sm:$0xff] }
 0x3be   :  { %4090 = vmatpush3.msra.mxu0 %v5083_v34  ;;  %4117 = vmatpush3.msra.mxu1 %v5078_v32  ;;  %v1209_v34 = vsub.s32 2, %v4863_v2 }
 0x3bf   :  { %4091 = vmatprep.subr.mxu0 %v4631_v0  ;;  %4118 = vmatprep.subr.mxu1 %v4631_v0 }
 0x3c0   :  { %4092 = vmatpush3.msra.mxu0 %v5086_v35  ;;  %4119 = vmatpush3.msra.mxu1 %v5080_v33  ;;  %v1801_v53 = vrot.slane %v5284_v50, %v1209_v34 }
 0x3c1   :  { %4093 = vmatprep.subr.mxu0 %v4631_v0  ;;  %4120 = vmatprep.subr.mxu1 %v4631_v0 }
 0x3c2   :  { %4094 = vmatpush3.msra.mxu0 %v5089_v36  ;;  %4121 = vmatpush3.msra.mxu1 %v5146_v21  ;;  %v1210_v36 = vrot.slane %v4866_v4, %v1209_v34 }
 0x3c3   :  { %4095 = vmatprep.subr.mxu0 %v4631_v0  ;;  %4122 = vmatprep.subr.mxu1 %v4631_v0 }
 0x3c4   :  { %4096 = vmatpush3.msra.mxu0 %v5093_v37  ;;  %4123 = vmatpush3.msra.mxu1 %v5151_v30 }
 0x3c5   :  { %4097 = vmatprep.subr.mxu0 %v4631_v0  ;;  %4125 = vmatmul.mubr.f32.vlgmr.msra.gmra.mxu1 %v1289_v6  ;;  %v1817_v6 = vld [vmem:[#allocation5 + $0xd8] sm:$0xff] }
 0x3c6   :  { %4146 = vmatprep.subr.mxu1 %v4631_v0  ;;  %4098 = vmatpush3.msra.mxu0 %v5096_v38 }
 0x3c7   :  { %4147 = vmatpush3.msra.mxu1 %v5070_v24  ;;  %4099 = vmatprep.subr.mxu0 %v4631_v0 }
 0x3c8   :  { %4148 = vmatprep.subr.mxu1 %v4631_v0  ;;  %4100 = vmatpush3.msra.mxu0 %v5104_v42 }
 0x3c9   :  { %4149 = vmatpush3.msra.mxu1 %v5072_v25  ;;  %4101 = vmatprep.subr.mxu0 %v4631_v0 }
 0x3ca   :  { %4150 = vmatprep.subr.mxu1 %v4631_v0  ;;  %4102 = vmatpush3.msra.mxu0 %v5149_v29 }
 0x3cb   :  { %4151 = vmatpush3.msra.mxu1 %v5074_v26  ;;  %4103 = vmatprep.subr.mxu0 %v4631_v0 }
 0x3cc   :  { %4152 = vmatprep.subr.mxu1 %v4631_v0  ;;  %4104 = vmatpush3.msra.mxu0 %v5157_v45 }
 0x3cd   :  { %4105 = vmatprep.mubr.msk.f32.mxu0 %vm4632_vm0, %v4631_v0  ;;  %4153 = vmatpush3.msra.mxu1 %v5076_v31 }
 0x3ce   :  { %4106 = vmatmul.mubr.f32.vlgmr.msra.gmra.mxu0 %v1288_v14  ;;  %4127 = vmatprep.subr.mxu0 %v4631_v0  ;;  %v5299_v14 = vand.u32 4294901760, %v1818_v61 }
 0x3cf   :  { %4154 = vmatprep.subr.mxu1 %v4631_v0  ;;  %4128 = vmatpush3.msra.mxu0 %v1316_v39 }
 0x3d0   :  { %4155 = vmatpush3.msra.mxu1 %v5078_v32  ;;  %4129 = vmatprep.subr.mxu0 %v4631_v0 }
 0x3d1   :  { %4156 = vmatprep.subr.mxu1 %v4631_v0  ;;  %4130 = vmatpush3.msra.mxu0 %v1323_v40 }
 0x3d2   :  { %4157 = vmatpush3.msra.mxu1 %v5080_v33  ;;  %4131 = vmatprep.subr.mxu0 %v4631_v0 }
 0x3d3   :  { %4158 = vmatprep.subr.mxu1 %v4631_v0  ;;  %4132 = vmatpush3.msra.mxu0 %v1330_v41 }
 0x3d4   :  { %4159 = vmatpush3.msra.mxu1 %v5146_v21  ;;  %4133 = vmatprep.subr.mxu0 %v4631_v0 }
 0x3d5   :  { %4160 = vmatprep.subr.mxu1 %v4631_v0  ;;  %4134 = vmatpush3.msra.mxu0 %v1337_v43 }
 0x3d6   :  { %4161 = vmatpush3.msra.mxu1 %v5151_v30  ;;  %4162 = vmatprep.mubr.msk.f32.mxu1 %vm4632_vm0, %v4631_v0 }
 0x3d7   :  { %4135 = vmatprep.subr.mxu0 %v4631_v0  ;;  %4163 = vmatmul.mubr.f32.vlgmr.msra.gmra.mxu1 %v5183_v63 }
 0x3d8   :  { %4136 = vmatpush3.msra.mxu0 %v1344_v47  ;;  %4143 = vmatprep.mubr.msk.f32.mxu0 %vm4632_vm0, %v4631_v0 }
 0x3d9   :  { %4137 = vmatprep.subr.mxu0 %v4631_v0  ;;  %4184 = vmatprep.subr.mxu1 %v4631_v0 }
 0x3da   :  { %4138 = vmatpush3.msra.mxu0 %v1351_v51  ;;  %4200 = vmatprep.mubr.msk.f32.mxu1 %vm4632_vm0, %v4631_v0 }
 0x3db   :  { %4139 = vmatprep.subr.mxu0 %v4631_v0 }
 0x3dc   :  { %4140 = vmatpush3.msra.mxu0 %v1358_v44 }
 0x3dd   :  { %4141 = vmatprep.subr.mxu0 %v4631_v0 }
 0x3de   :  { %4142 = vmatpush3.msra.mxu0 %v1365_v48 }
 0x3df   :  { %4144 = vmatmul.mubr.f32.vlgmr.msra.gmra.mxu0 %v5183_v63  ;;  %4165 = vmatprep.subr.mxu0 %v4631_v0  ;;  %v5297_v63 = vand.u32 4294901760, %v1819_v60 }
 0x3e0   :  { %4181 = vmatprep.mubr.msk.f32.mxu0 %vm4632_vm0, %v4631_v0  ;;  %4166 = vmatpush3.msra.mxu0 %v5295_v62 }
 0x3e1   :  { %4167 = vmatprep.subr.mxu0 %v4631_v0 }
 0x3e2   :  { %4168 = vmatpush3.msra.mxu0 %v5297_v63 }
 0x3e3   :  { %4169 = vmatprep.subr.mxu0 %v4631_v0 }
 0x3e4   :  { %4170 = vmatpush3.msra.mxu0 %v5299_v14 }
 0x3e5   :  { %4171 = vmatprep.subr.mxu0 %v4631_v0 }
 0x3e6   :  { %v1766_v13 = vpop.xlane.xlu0 %1765 }
 0x3e7   :  { %v1769_v15 = vmul.f32 0.03125, %v1766_v13 }
 0x3e9   :  { %v1771_v18 = vsub.f32 %v5174_v58, %v1769_v15 }
 0x3eb   :  { %v1773_v21 = vmul.f32 %v1771_v18, %v1771_v18 }
 0x3ed   :  { %v1777_v22 = vsel %vm627_vm2, %v1773_v21, 0.0 }
 0x475   :  { %v1404_v24 = vpop.f32.mrf.mxu1 }
 0x477   :  { %v4088_v25 = vpop.f32.mrf.mxu1 }
 0x478   :  { %v5303_v25 = vand.u32 4294901760, %v1816_v1 }
 0x47d   :  { %v1293_v26 = vpop.f32.mrf.mxu0 }
 0x47e   :  { %v1294_v38 = vadd.f32 %v1293_v26, %v1210_v36  ;;  %v5305_v26 = vand.u32 4294901760, %v1815_v7 }
 0x47f   :  { %v4069_v31 = vpop.f32.mrf.mxu0 }
 0x480   :  { %v1405_v40 = vadd.f32 %v1404_v24, %v1294_v38  ;;  %v5301_v24 = vand.u32 4294901760, %v1817_v6  ;;  %v5308_v31 = vsub.f32 %v1820_v59, %v5295_v62 }
 0x482   :  { %v5318_v34 = vsub.f32 %v1817_v6, %v5301_v24  ;;  %v1930_v36 = vand.u32 4294901760, %v5308_v31  ;;  %4172 = vmatpush3.msra.mxu0 %v5301_v24 }
 0x483   :  { %4173 = vmatprep.subr.mxu0 %v4631_v0 }
 0x484   :  { %4174 = vmatpush3.msra.mxu0 %v5303_v25 }
 0x485   :  { %v1573_v32 = vpop.f32.mrf.mxu1  ;;  %4175 = vmatprep.subr.mxu0 %v4631_v0 }
 0x486   :  { %4176 = vmatpush3.msra.mxu0 %v5305_v26 }
 0x487   :  { %v4126_v33 = vpop.f32.mrf.mxu1  ;;  %4177 = vmatprep.subr.mxu0 %v4631_v0 }
 0x488   :  { %v5314_v33 = vsub.f32 %v1818_v61, %v5299_v14 }
 0x48a   :  { %v1944_v38 = vand.u32 4294901760, %v5314_v33 }
 0x48e   :  { %v1492_v35 = vpop.f32.mrf.mxu0 }
 0x48f   :  { %v1493_v42 = vadd.f32 %v1492_v35, %v1405_v40  ;;  %v5321_v35 = vsub.f32 %v1816_v1, %v5303_v25  ;;  %v1951_v40 = vand.u32 4294901760, %v5318_v34 }
 0x490   :  { %v4107_v37 = vpop.f32.mrf.mxu0 }
 0x491   :  { %v1574_v43 = vadd.f32 %v1573_v32, %v1493_v42  ;;  %v5311_v32 = vsub.f32 %v1819_v60, %v5297_v63 }
 0x493   :  { %v1937_v37 = vand.u32 4294901760, %v5311_v32 }
 0x495   :  { %v1938_v42 = vsub.f32 %v5311_v32, %v1937_v37 }
 0x497   :  { %v1747_v39 = vpop.f32.mrf.mxu1 }
 0x499   :  { %v4164_v41 = vpop.f32.mrf.mxu1 }
 0x49a   :  { %v1931_v41 = vsub.f32 %v5308_v31, %v1930_v36 }
 0x49f   :  { %v1668_v47 = vpop.f32.mrf.mxu0 }
 0x4a0   :  { %v1669_v51 = vadd.f32 %v1668_v47, %v1574_v43  ;;  %v1945_v43 = vsub.f32 %v5314_v33, %v1944_v38  ;;  %v1958_v47 = vand.u32 4294901760, %v5321_v35 }
 0x4a1   :  { %v4145_v8 = vpop.f32.mrf.mxu0 }
 0x4a2   :  { %v1748_v9 = vadd.f32 %v1747_v39, %v1669_v51  ;;  %v5329_v39 = vsub.f32 %v1815_v7, %v5305_v26  ;;  %v1932_v51 = vand.u32 4294901760, %v1931_v41  ;;  %v1939_v8 = vand.u32 4294901760, %v1938_v42 }
 0x4a4   :  { %v3498_v10 = vmul.f32 -1.442695, %v1748_v9  ;;  %v1952_v9 = vsub.f32 %v5318_v34, %v1951_v40  ;;  %4185 = vmatpush3.msra.mxu1 %v1932_v51 }
 0x4a5   :  { %4186 = vmatprep.subr.mxu1 %v4631_v0 }
 0x4a6   :  { %4528 = vpow2.f32 %v3498_v10  ;;  %v1965_v10 = vand.u32 4294901760, %v5329_v39  ;;  %4187 = vmatpush3.msra.mxu1 %v1939_v8  ;;  %v1953_v13 = vand.u32 4294901760, %v1952_v9 }
 0x4a7   :  { %4188 = vmatprep.subr.mxu1 %v4631_v0 }
 0x4a8   :  { %v1966_v15 = vsub.f32 %v5329_v39, %v1965_v10 }
 0x4b3   :  { %v4529_v11 = vpop.eup %4528 }
 0x4b4   :  { %v1754_v12 = vadd.f32 1.0, %v4529_v11  ;;  %v1946_v11 = vand.u32 4294901760, %v1945_v43  ;;  %v2368_v43 = vld [vmem:[#allocation5 + $0x80] sm:$0xff] }
 0x4b5   :  { %v5538_v9 = vand.u32 4294901760, %v2368_v43 }
 0x4b6   :  { %4530 = vrcp.f32 %v1754_v12  ;;  %v1959_v12 = vsub.f32 %v5321_v35, %v1958_v47  ;;  %4189 = vmatpush3.msra.mxu1 %v1946_v11  ;;  %v2367_v11 = vld [vmem:[#allocation5 + $0x50] sm:$0xff] }
 0x4b7   :  { %4190 = vmatprep.subr.mxu1 %v4631_v0 }
 0x4b8   :  { %4191 = vmatpush3.msra.mxu1 %v1953_v13 }
 0x4b9   :  { %4192 = vmatprep.subr.mxu1 %v4631_v0 }
 0x4c3   :  { %v4531_v16 = vpop.eup %4530 }
 0x4c4   :  { %v1758_v4 = vsub.f32 1.0, %v4531_v16  ;;  %v1757_v20 = vmul.f32 %v4536_v17, %v4531_v16  ;;  %v1960_v16 = vand.u32 4294901760, %v1959_v12 }
 0x4c6   :  { %v1759_v23 = vmul.f32 %v1758_v4, %v5170_v54  ;;  %v1967_v4 = vand.u32 4294901760, %v1966_v15  ;;  %4193 = vmatpush3.msra.mxu1 %v1960_v16  ;;  %v5549_v15 = vsub.f32 %v2368_v43, %v5538_v9  ;;  %v5551_v16 = vand.u32 4294901760, %v2367_v11 }
 0x4c7   :  { %4194 = vmatprep.subr.mxu1 %v4631_v0 }
 0x4c8   :  { %v1760_v27 = vadd.f32 %v1759_v23, %v1757_v20  ;;  %4195 = vmatpush3.msra.mxu1 %v1967_v4  ;;  %v1814_v20 = vld [vmem:[#allocation5 + $0x48] sm:$0xff] }
 0x4c9   :  { %4196 = vmatprep.subr.mxu1 %v4631_v0  ;;  %v5367_v23 = vand.u32 4294901760, %v1814_v20 }
 0x4ca   :  { %v1761_v19 = vsel %vm627_vm2, %v1760_v27, 0.0 }
 0x4cb   :  { %1762 = vadd.xlane.f32.xlu1 %v1761_v19  ;;  %v1813_v19 = vld [vmem:[#allocation5 + $0x18] sm:$0xff]  ;;  %v5370_v21 = vsub.f32 %v1814_v20, %v5367_v23  ;;  %4178 = vmatpush3.msra.mxu0 %v5367_v23  ;;  %v2518_v20 = vand.u32 4294901760, %v5549_v15 }
 0x4cc   :  { %4179 = vmatprep.subr.mxu0 %v4631_v0 }
 0x4cf   :  { %1778 = vadd.xlane.f32.xlu1 %v1777_v22  ;;  %v5372_v22 = vand.u32 4294901760, %v1813_v19 }
 0x4d1   :  { %4180 = vmatpush3.msra.mxu0 %v5372_v22 }
 0x4d2   :  { %4203 = vmatprep.subr.mxu0 %v4631_v0 }
 0x554   :  { %v1763_v28 = vpop.xlane.xlu1 %1762 }
 0x555   :  { %v1768_v29 = vmul.f32 0.03125, %v1763_v28  ;;  %v1972_v28 = vand.u32 4294901760, %v5370_v21 }
 0x557   :  { %v5279_v30 = vsub.f32 %v1760_v27, %v1768_v29  ;;  %v5378_v29 = vsub.f32 %v1813_v19, %v5372_v22 }
 0x558   :  { %v1779_v44 = vpop.xlane.xlu1 %1778 }
 0x559   :  { %v1781_v45 = vmul.f32 0.03125, %v1779_v44  ;;  %v1772_v46 = vmul.f32 %v5279_v30, %v5279_v30  ;;  %v1973_v44 = vsub.f32 %v5370_v21, %v1972_v28 }
 0x55b   :  { %v1783_v48 = vadd.f32 1e-05, %v1781_v45  ;;  %v1774_v49 = vsel %vm627_vm2, %v1772_v46, 0.0  ;;  %v1979_v45 = vand.u32 4294901760, %v5378_v29  ;;  %v1974_v46 = vand.u32 4294901760, %v1973_v44 }
 0x55c   :  { %1775 = vadd.xlane.f32.xlu0 %v1774_v49 }
 0x55d   :  { %4532 = vrsqrt.f32 %v1783_v48  ;;  %v1980_v48 = vsub.f32 %v5378_v29, %v1979_v45  ;;  %4197 = vmatpush3.msra.mxu1 %v1974_v46 }
 0x55e   :  { %4198 = vmatprep.subr.mxu1 %v4631_v0 }
 0x55f   :  { %v1981_v49 = vand.u32 4294901760, %v1980_v48 }
 0x561   :  { %4199 = vmatpush3.msra.mxu1 %v1981_v49 }
 0x562   :  { %4222 = vmatprep.subr.mxu1 %v4631_v0 }
 0x56a   :  { %v4533_v54 = vpop.eup %4532 }
 0x56b   :  { %v1787_v55 = vmul.f32 %v4533_v54, %v1771_v18 }
 0x56d   :  { %v1802_v57 = vmul.f32 %v1801_v53, %v1787_v55  ;;  %v1791_v53 = vrot.slane %v5284_v50, %v67_v3 }
 0x56f   :  { %v5291_v58 = vadd.f32 %v1806_v56, %v1802_v57  ;;  %v1796_v56 = vrot.slane %v5284_v50, %v639_v5 }
 0x571   :  { %3472 = vrot.lane.b32.xlu1 %v5291_v58, %s4633_s0 }
 0x5e5   :  { %v1776_v18 = vpop.xlane.xlu0 %1775 }
 0x5e6   :  { %v1780_v17 = vmul.f32 0.03125, %v1776_v18  ;;  %v2366_v18 = vld [vmem:[#allocation5 + $0x20] sm:$0xff] }
 0x5e8   :  { %v1782_v27 = vadd.f32 1e-05, %v1780_v17 }
 0x5ea   :  { %4534 = vrsqrt.f32 %v1782_v27  ;;  %v5561_v27 = vand.u32 4294901760, %v2366_v18 }
 0x5f7   :  { %v4535_v54 = vpop.eup %4534 }
 0x5f8   :  { %v1786_v55 = vmul.f32 %v4535_v54, %v5279_v30 }
 0x5fa   :  { %v1792_v57 = vmul.f32 %v1791_v53, %v1786_v55 }
 0x5fc   :  { %v1797_v59 = vadd.f32 %v1796_v56, %v1792_v57 }
 0x5fe   :  { %1809 = vrot.lane.b32.xlu0 %v1797_v59, %s4635_s30 }
 0x670   :  { %v5399_v60 = vpop.permute.xlu0 %1809 }
 0x671   :  { %v1812_v61 = vsel %vm627_vm2, %v5291_v58, %v5399_v60 }
 0x672   :  { %v1826_v6 = vsel %vm72_vm1, %v1812_v61, 0 }
 0x673   :  { %v5405_v3 = vand.u32 4294901760, %v1826_v6 }
 0x675   :  { %v1902_v30 = vsub.f32 %v1826_v6, %v5405_v3  ;;  %4201 = vmatmul.mubr.f32.vlgmr.msra.gmra.mxu1 %v5405_v3 }
 0x676   :  { %4223 = vmatpush3.msra.mxu1 %v5295_v62  ;;  %4238 = vmatprep.mubr.msk.f32.mxu1 %vm4632_vm0, %v4631_v0 }
 0x677   :  { %v1903_v5 = vand.u32 4294901760, %v1902_v30  ;;  %4224 = vmatprep.subr.mxu1 %v4631_v0 }
 0x678   :  { %4225 = vmatpush3.msra.mxu1 %v5297_v63 }
 0x679   :  { %4226 = vmatprep.subr.mxu1 %v4631_v0  ;;  %v1904_v50 = vsub.f32 %v1902_v30, %v1903_v5 }
 0x67a   :  { %4227 = vmatpush3.msra.mxu1 %v5299_v14 }
 0x67b   :  { %4228 = vmatprep.subr.mxu1 %v4631_v0  ;;  %v1905_v58 = vand.u32 4294901760, %v1904_v50 }
 0x67c   :  { %4229 = vmatpush3.msra.mxu1 %v5301_v24 }
 0x67d   :  { %4230 = vmatprep.subr.mxu1 %v4631_v0  ;;  %4182 = vmatmul.mubr.f32.vlgmr.msra.gmra.mxu0 %v1905_v58 }
 0x67e   :  { %4204 = vmatpush3.msra.mxu0 %v5308_v31  ;;  %4231 = vmatpush3.msra.mxu1 %v5303_v25 }
 0x67f   :  { %4205 = vmatprep.subr.mxu0 %v4631_v0  ;;  %4232 = vmatprep.subr.mxu1 %v4631_v0 }
 0x680   :  { %4206 = vmatpush3.msra.mxu0 %v5311_v32  ;;  %4233 = vmatpush3.msra.mxu1 %v5305_v26  ;;  %v2370_v32 = vld [vmem:[#allocation5 + $0xe0] sm:$0xff] }
 0x681   :  { %4207 = vmatprep.subr.mxu0 %v4631_v0  ;;  %4234 = vmatprep.subr.mxu1 %v4631_v0 }
 0x682   :  { %4208 = vmatpush3.msra.mxu0 %v5314_v33  ;;  %4235 = vmatpush3.msra.mxu1 %v5367_v23 }
 0x683   :  { %4209 = vmatprep.subr.mxu0 %v4631_v0  ;;  %4236 = vmatprep.subr.mxu1 %v4631_v0 }
 0x684   :  { %4210 = vmatpush3.msra.mxu0 %v5318_v34  ;;  %4237 = vmatpush3.msra.mxu1 %v5372_v22 }
 0x685   :  { %4211 = vmatprep.subr.mxu0 %v4631_v0  ;;  %4239 = vmatmul.mubr.f32.vlgmr.msra.gmra.mxu1 %v1903_v5 }
 0x686   :  { %4260 = vmatprep.subr.mxu1 %v4631_v0  ;;  %4212 = vmatpush3.msra.mxu0 %v5321_v35 }
 0x687   :  { %4261 = vmatpush3.msra.mxu1 %v5295_v62  ;;  %4213 = vmatprep.subr.mxu0 %v4631_v0  ;;  %v2373_v62 = vld [vmem:[#allocation5 + $0x170] sm:$0xff] }
 0x688   :  { %4262 = vmatprep.subr.mxu1 %v4631_v0  ;;  %4214 = vmatpush3.msra.mxu0 %v5329_v39 }
 0x689   :  { %4263 = vmatpush3.msra.mxu1 %v5297_v63  ;;  %4215 = vmatprep.subr.mxu0 %v4631_v0  ;;  %v5495_v63 = vand.u32 4294901760, %v2373_v62 }
 0x68a   :  { %4264 = vmatprep.subr.mxu1 %v4631_v0  ;;  %4216 = vmatpush3.msra.mxu0 %v5370_v21  ;;  %v2519_v21 = vsub.f32 %v5549_v15, %v2518_v20 }
 0x68b   :  { %4265 = vmatpush3.msra.mxu1 %v5299_v14  ;;  %4217 = vmatprep.subr.mxu0 %v4631_v0  ;;  %v2372_v14 = vld [vmem:[#allocation5 + $0x140] sm:$0xff]  ;;  %v5498_v1 = vsub.f32 %v2373_v62, %v5495_v63 }
 0x68c   :  { %4266 = vmatprep.subr.mxu1 %v4631_v0  ;;  %4218 = vmatpush3.msra.mxu0 %v5378_v29  ;;  %v5500_v7 = vand.u32 4294901760, %v2372_v14  ;;  %v2520_v44 = vand.u32 4294901760, %v2519_v21 }
 0x68d   :  { %4219 = vmatprep.mubr.msk.f32.mxu0 %vm4632_vm0, %v4631_v0  ;;  %4267 = vmatpush3.msra.mxu1 %v5301_v24  ;;  %v2371_v24 = vld [vmem:[#allocation5 + $0x110] sm:$0xff] }
 0x68e   :  { %4220 = vmatmul.mubr.f32.vlgmr.msra.gmra.mxu0 %v1902_v30  ;;  %4241 = vmatprep.subr.mxu0 %v4631_v0  ;;  %v5508_v31 = vand.u32 4294901760, %v2371_v24 }
 0x68f   :  { %4268 = vmatprep.subr.mxu1 %v4631_v0  ;;  %4242 = vmatpush3.msra.mxu0 %v1930_v36  ;;  %v5519_v36 = vand.u32 4294901760, %v2370_v32 }
 0x690   :  { %4269 = vmatpush3.msra.mxu1 %v5303_v25  ;;  %4243 = vmatprep.subr.mxu0 %v4631_v0  ;;  %v2483_v25 = vand.u32 4294901760, %v5498_v1  ;;  %v5517_v35 = vsub.f32 %v2371_v24, %v5508_v31 }
 0x691   :  { %4270 = vmatprep.subr.mxu1 %v4631_v0  ;;  %4244 = vmatpush3.msra.mxu0 %v1937_v37  ;;  %v2369_v37 = vld [vmem:[#allocation5 + $0xb0] sm:$0xff]  ;;  %v5528_v41 = vsub.f32 %v2370_v32, %v5519_v36 }
 0x692   :  { %4271 = vmatpush3.msra.mxu1 %v5305_v26  ;;  %4245 = vmatprep.subr.mxu0 %v4631_v0  ;;  %v5506_v26 = vsub.f32 %v2372_v14, %v5500_v7  ;;  %v2484_v33 = vsub.f32 %v5498_v1, %v2483_v25  ;;  %v5531_v42 = vand.u32 4294901760, %v2369_v37 }
 0x693   :  { %4272 = vmatprep.subr.mxu1 %v4631_v0  ;;  %4246 = vmatpush3.msra.mxu0 %v1944_v38  ;;  %v2504_v8 = vand.u32 4294901760, %v5528_v41 }
 0x694   :  { %4273 = vmatpush3.msra.mxu1 %v5367_v23  ;;  %4247 = vmatprep.subr.mxu0 %v4631_v0  ;;  %v2490_v34 = vand.u32 4294901760, %v5506_v26  ;;  %v2485_v38 = vand.u32 4294901760, %v2484_v33  ;;  %v5559_v23 = vsub.f32 %v2367_v11, %v5551_v16 }
 0x695   :  { %4274 = vmatprep.subr.mxu1 %v4631_v0  ;;  %4248 = vmatpush3.msra.mxu0 %v1951_v40  ;;  %v2497_v40 = vand.u32 4294901760, %v5517_v35  ;;  %v2505_v13 = vsub.f32 %v5528_v41, %v2504_v8 }
 0x696   :  { %4275 = vmatpush3.msra.mxu1 %v5372_v22  ;;  %4276 = vmatprep.mubr.msk.f32.mxu1 %vm4632_vm0, %v4631_v0  ;;  %v2491_v39 = vsub.f32 %v5506_v26, %v2490_v34  ;;  %v2525_v22 = vand.u32 4294901760, %v5559_v23 }
 0x697   :  { %4249 = vmatprep.subr.mxu0 %v4631_v0  ;;  %4277 = vmatmul.mubr.f32.vlgmr.msra.gmra.mxu1 %v5405_v3  ;;  %v2498_v51 = vsub.f32 %v5517_v35, %v2497_v40  ;;  %v2506_v17 = vand.u32 4294901760, %v2505_v13 }
 0x698   :  { %4250 = vmatpush3.msra.mxu0 %v1958_v47  ;;  %4257 = vmatprep.mubr.msk.f32.mxu0 %vm4632_vm0, %v4631_v0  ;;  %v2492_v47 = vand.u32 4294901760, %v2491_v39 }
 0x699   :  { %4251 = vmatprep.subr.mxu0 %v4631_v0  ;;  %4298 = vmatprep.subr.mxu1 %v4631_v0  ;;  %v2499_v12 = vand.u32 4294901760, %v2498_v51 }
 0x69a   :  { %4252 = vmatpush3.msra.mxu0 %v1965_v10  ;;  %4314 = vmatprep.mubr.msk.f32.mxu1 %vm4632_vm0, %v4631_v0  ;;  %v5542_v10 = vsub.f32 %v2369_v37, %v5531_v42 }
 0x69b   :  { %4253 = vmatprep.subr.mxu0 %v4631_v0  ;;  %4299 = vmatpush3.msra.mxu1 %v2485_v38 }
 0x69c   :  { %4254 = vmatpush3.msra.mxu0 %v1972_v28  ;;  %4300 = vmatprep.subr.mxu1 %v4631_v0  ;;  %v2511_v4 = vand.u32 4294901760, %v5542_v10  ;;  %v5574_v28 = vsub.f32 %v2366_v18, %v5561_v27 }
 0x69d   :  { %4255 = vmatprep.subr.mxu0 %v4631_v0  ;;  %4301 = vmatpush3.msra.mxu1 %v2492_v47 }
 0x69e   :  { %4256 = vmatpush3.msra.mxu0 %v1979_v45  ;;  %4302 = vmatprep.subr.mxu1 %v4631_v0  ;;  %v2512_v19 = vsub.f32 %v5542_v10, %v2511_v4  ;;  %v2526_v45 = vsub.f32 %v5559_v23, %v2525_v22  ;;  %v2532_v46 = vand.u32 4294901760, %v5574_v28 }
 0x69f   :  { %4258 = vmatmul.mubr.f32.vlgmr.msra.gmra.mxu0 %v5405_v3  ;;  %4279 = vmatprep.subr.mxu0 %v4631_v0  ;;  %v5591_v3 = vld [vmem:[#allocation7] sm:$0xff] }
 0x6a0   :  { %4295 = vmatprep.mubr.msk.f32.mxu0 %vm4632_vm0, %v4631_v0  ;;  %4280 = vmatpush3.msra.mxu0 %v5495_v63  ;;  %v2513_v29 = vand.u32 4294901760, %v2512_v19  ;;  %v2527_v48 = vand.u32 4294901760, %v2526_v45  ;;  %v2533_v49 = vsub.f32 %v5574_v28, %v2532_v46  ;;  %v1824_v30 = vrot.slane %v5591_v3, %v1805_v52 }
 0x6a1   :  { %4281 = vmatprep.subr.mxu0 %v4631_v0  ;;  %4303 = vmatpush3.msra.mxu1 %v2499_v12 }
 0x6a2   :  { %4282 = vmatpush3.msra.mxu0 %v5500_v7  ;;  %4304 = vmatprep.subr.mxu1 %v4631_v0  ;;  %v2534_v53 = vand.u32 4294901760, %v2533_v49  ;;  %v2919_v49 = vld [vmem:[#allocation5 + $0x28] sm:$0xff] }
 0x6a3   :  { %4283 = vmatprep.subr.mxu0 %v4631_v0  ;;  %4305 = vmatpush3.msra.mxu1 %v2506_v17 }
 0x6a4   :  { %4284 = vmatpush3.msra.mxu0 %v5508_v31  ;;  %4306 = vmatprep.subr.mxu1 %v4631_v0 }
 0x6a5   :  { %4285 = vmatprep.subr.mxu0 %v4631_v0  ;;  %4307 = vmatpush3.msra.mxu1 %v2513_v29 }
 0x6a6   :  { %4286 = vmatpush3.msra.mxu0 %v5519_v36  ;;  %4308 = vmatprep.subr.mxu1 %v4631_v0 }
 0x6a7   :  { %4287 = vmatprep.subr.mxu0 %v4631_v0  ;;  %4309 = vmatpush3.msra.mxu1 %v2520_v44 }
 0x6a8   :  { %4288 = vmatpush3.msra.mxu0 %v5531_v42  ;;  %4310 = vmatprep.subr.mxu1 %v4631_v0 }
 0x6a9   :  { %4289 = vmatprep.subr.mxu0 %v4631_v0  ;;  %4311 = vmatpush3.msra.mxu1 %v2527_v48 }
 0x6aa   :  { %4290 = vmatpush3.msra.mxu0 %v5538_v9  ;;  %4312 = vmatprep.subr.mxu1 %v4631_v0 }
 0x6ab   :  { %4291 = vmatprep.subr.mxu0 %v4631_v0  ;;  %4313 = vmatpush3.msra.mxu1 %v2534_v53 }
 0x6ac   :  { %4292 = vmatpush3.msra.mxu0 %v5551_v16  ;;  %4336 = vmatprep.subr.mxu1 %v4631_v0 }
 0x6ad   :  { %4293 = vmatprep.subr.mxu0 %v4631_v0 }
 0x6ae   :  { %4294 = vmatpush3.msra.mxu0 %v5561_v27 }
 0x6af   :  { %4317 = vmatprep.subr.mxu0 %v4631_v0 }
 0x735   :  { %v2018_v54 = vpop.f32.mrf.mxu1 }
 0x737   :  { %v4202_v55 = vpop.f32.mrf.mxu1 }
 0x73d   :  { %v1907_v56 = vpop.f32.mrf.mxu0 }
 0x73e   :  { %v1908_v50 = vadd.f32 %v1907_v56, %v1824_v30  ;;  %v5753_v56 = vand.u32 4294901760, %v2919_v49 }
 0x73f   :  { %v4183_v57 = vpop.f32.mrf.mxu0 }
 0x740   :  { %v2019_v62 = vadd.f32 %v2018_v54, %v1908_v50 }
 0x745   :  { %v2187_v59 = vpop.f32.mrf.mxu1 }
 0x747   :  { %v4240_v61 = vpop.f32.mrf.mxu1 }
 0x74e   :  { %v2106_v6 = vpop.f32.mrf.mxu0 }
 0x74f   :  { %v2107_v24 = vadd.f32 %v2106_v6, %v2019_v62  ;;  %v5766_v6 = vsub.f32 %v2919_v49, %v5753_v56 }
 0x750   :  { %v4221_v5 = vpop.f32.mrf.mxu0 }
 0x751   :  { %v2188_v32 = vadd.f32 %v2187_v59, %v2107_v24 }
 0x757   :  { %v2361_v58 = vpop.f32.mrf.mxu1 }
 0x759   :  { %v4278_v14 = vpop.f32.mrf.mxu1 }
 0x75f   :  { %v2282_v33 = vpop.f32.mrf.mxu0 }
 0x760   :  { %v2283_v37 = vadd.f32 %v2282_v33, %v2188_v32 }
 0x761   :  { %v4259_v38 = vpop.f32.mrf.mxu0 }
 0x762   :  { %v2362_v39 = vadd.f32 %v2361_v58, %v2283_v37  ;;  %v3085_v58 = vand.u32 4294901760, %v5766_v6 }
 0x764   :  { %v2365_v43 = vmax.f32 %v2362_v39, 0.0  ;;  %v3086_v14 = vsub.f32 %v5766_v6, %v3085_v58 }
 0x766   :  { %v2379_v47 = vsel %vm72_vm1, %v2365_v43, 0  ;;  %v3087_v24 = vand.u32 4294901760, %v3086_v14 }
 0x767   :  { %v5597_v51 = vand.u32 4294901760, %v2379_v47 }
 0x769   :  { %v2455_v11 = vsub.f32 %v2379_v47, %v5597_v51  ;;  %4315 = vmatmul.mubr.f32.vlgmr.msra.gmra.mxu1 %v5597_v51  ;;  %v2376_v47 = vsub.s32 4, %v4863_v2 }
 0x76a   :  { %4337 = vmatpush3.msra.mxu1 %v5495_v63  ;;  %4352 = vmatprep.mubr.msk.f32.mxu1 %vm4632_vm0, %v4631_v0 }
 0x76b   :  { %4338 = vmatprep.subr.mxu1 %v4631_v0  ;;  %v2456_v52 = vand.u32 4294901760, %v2455_v11 }
 0x76c   :  { %4339 = vmatpush3.msra.mxu1 %v5500_v7 }
 0x76d   :  { %4340 = vmatprep.subr.mxu1 %v4631_v0  ;;  %v2457_v12 = vsub.f32 %v2455_v11, %v2456_v52 }
 0x76e   :  { %4341 = vmatpush3.msra.mxu1 %v5508_v31 }
 0x76f   :  { %4342 = vmatprep.subr.mxu1 %v4631_v0  ;;  %v2458_v13 = vand.u32 4294901760, %v2457_v12 }
 0x770   :  { %4343 = vmatpush3.msra.mxu1 %v5519_v36 }
 0x771   :  { %4344 = vmatprep.subr.mxu1 %v4631_v0  ;;  %4296 = vmatmul.mubr.f32.vlgmr.msra.gmra.mxu0 %v2458_v13 }
 0x772   :  { %4318 = vmatpush3.msra.mxu0 %v5498_v1  ;;  %4345 = vmatpush3.msra.mxu1 %v5531_v42 }
 0x773   :  { %4319 = vmatprep.subr.mxu0 %v4631_v0  ;;  %4346 = vmatprep.subr.mxu1 %v4631_v0 }
 0x774   :  { %4320 = vmatpush3.msra.mxu0 %v5506_v26  ;;  %4347 = vmatpush3.msra.mxu1 %v5538_v9 }
 0x775   :  { %4321 = vmatprep.subr.mxu0 %v4631_v0  ;;  %4348 = vmatprep.subr.mxu1 %v4631_v0 }
 0x776   :  { %4322 = vmatpush3.msra.mxu0 %v5517_v35  ;;  %4349 = vmatpush3.msra.mxu1 %v5551_v16 }
 0x777   :  { %4323 = vmatprep.subr.mxu0 %v4631_v0  ;;  %4350 = vmatprep.subr.mxu1 %v4631_v0 }
 0x778   :  { %4324 = vmatpush3.msra.mxu0 %v5528_v41  ;;  %4351 = vmatpush3.msra.mxu1 %v5561_v27 }
 0x779   :  { %4325 = vmatprep.subr.mxu0 %v4631_v0  ;;  %4353 = vmatmul.mubr.f32.vlgmr.msra.gmra.mxu1 %v2456_v52 }
 0x77a   :  { %4374 = vmatprep.subr.mxu1 %v4631_v0  ;;  %4326 = vmatpush3.msra.mxu0 %v5542_v10  ;;  %v2922_v10 = vld [vmem:[#allocation5 + $0xb8] sm:$0xff] }
 0x77b   :  { %4375 = vmatpush3.msra.mxu1 %v5495_v63  ;;  %4327 = vmatprep.subr.mxu0 %v4631_v0  ;;  %v2926_v63 = vld [vmem:[#allocation5 + $0x178] sm:$0xff]  ;;  %v5723_v17 = vand.u32 4294901760, %v2922_v10 }
 0x77c   :  { %4376 = vmatprep.subr.mxu1 %v4631_v0  ;;  %4328 = vmatpush3.msra.mxu0 %v5549_v15  ;;  %v5687_v1 = vand.u32 4294901760, %v2926_v63 }
 0x77d   :  { %4377 = vmatpush3.msra.mxu1 %v5500_v7  ;;  %4329 = vmatprep.subr.mxu0 %v4631_v0  ;;  %v2925_v7 = vld [vmem:[#allocation5 + $0x148] sm:$0xff] }
 0x77e   :  { %4378 = vmatprep.subr.mxu1 %v4631_v0  ;;  %4330 = vmatpush3.msra.mxu0 %v5559_v23  ;;  %v5692_v26 = vand.u32 4294901760, %v2925_v7 }
 0x77f   :  { %4379 = vmatpush3.msra.mxu1 %v5508_v31  ;;  %4331 = vmatprep.subr.mxu0 %v4631_v0  ;;  %v2924_v31 = vld [vmem:[#allocation5 + $0x118] sm:$0xff] }
 0x780   :  { %4380 = vmatprep.subr.mxu1 %v4631_v0  ;;  %4332 = vmatpush3.msra.mxu0 %v5574_v28  ;;  %v5698_v35 = vsub.f32 %v2925_v7, %v5692_v26  ;;  %v2920_v28 = vld [vmem:[#allocation5 + $0x58] sm:$0xff] }
 0x781   :  { %4333 = vmatprep.mubr.msk.f32.mxu0 %vm4632_vm0, %v4631_v0  ;;  %4381 = vmatpush3.msra.mxu1 %v5519_v36  ;;  %v5700_v36 = vand.u32 4294901760, %v2924_v31 }
 0x782   :  { %4334 = vmatmul.mubr.f32.vlgmr.msra.gmra.mxu0 %v2455_v11  ;;  %4355 = vmatprep.subr.mxu0 %v4631_v0  ;;  %v2377_v11 = vrot.slane %v5591_v3, %v2376_v47 }
 0x783   :  { %4382 = vmatprep.subr.mxu1 %v4631_v0  ;;  %4356 = vmatpush3.msra.mxu0 %v2483_v25  ;;  %v5690_v25 = vsub.f32 %v2926_v63, %v5687_v1 }
 0x784   :  { %4383 = vmatpush3.msra.mxu1 %v5531_v42  ;;  %4357 = vmatprep.subr.mxu0 %v4631_v0  ;;  %v3043_v42 = vand.u32 4294901760, %v5698_v35 }
 0x785   :  { %4384 = vmatprep.subr.mxu1 %v4631_v0  ;;  %4358 = vmatpush3.msra.mxu0 %v2490_v34  ;;  %v3036_v34 = vand.u32 4294901760, %v5690_v25 }
 0x786   :  { %4385 = vmatpush3.msra.mxu1 %v5538_v9  ;;  %4359 = vmatprep.subr.mxu0 %v4631_v0 }
 0x787   :  { %4386 = vmatprep.subr.mxu1 %v4631_v0  ;;  %4360 = vmatpush3.msra.mxu0 %v2497_v40  ;;  %v2923_v40 = vld [vmem:[#allocation5 + $0xe8] sm:$0xff]  ;;  %v3037_v41 = vsub.f32 %v5690_v25, %v3036_v34 }
 0x788   :  { %4387 = vmatpush3.msra.mxu1 %v5551_v16  ;;  %4361 = vmatprep.subr.mxu0 %v4631_v0  ;;  %v5711_v9 = vand.u32 4294901760, %v2923_v40  ;;  %v3044_v16 = vsub.f32 %v5698_v35, %v3043_v42 }
 0x789   :  { %4388 = vmatprep.subr.mxu1 %v4631_v0  ;;  %4362 = vmatpush3.msra.mxu0 %v2504_v8  ;;  %v5709_v8 = vsub.f32 %v2924_v31, %v5700_v36  ;;  %v3038_v15 = vand.u32 4294901760, %v3037_v41 }
 0x78a   :  { %4389 = vmatpush3.msra.mxu1 %v5561_v27  ;;  %4390 = vmatprep.mubr.msk.f32.mxu1 %vm4632_vm0, %v4631_v0  ;;  %v5720_v18 = vsub.f32 %v2923_v40, %v5711_v9  ;;  %v3045_v23 = vand.u32 4294901760, %v3044_v16 }
 0x78b   :  { %4363 = vmatprep.subr.mxu0 %v4631_v0  ;;  %4391 = vmatmul.mubr.f32.vlgmr.msra.gmra.mxu1 %v5597_v51 }
 0x78c   :  { %4364 = vmatpush3.msra.mxu0 %v2511_v4  ;;  %4371 = vmatprep.mubr.msk.f32.mxu0 %vm4632_vm0, %v4631_v0  ;;  %v3050_v4 = vand.u32 4294901760, %v5709_v8  ;;  %v3057_v19 = vand.u32 4294901760, %v5720_v18 }
 0x78d   :  { %4365 = vmatprep.subr.mxu0 %v4631_v0  ;;  %4412 = vmatprep.subr.mxu1 %v4631_v0 }
 0x78e   :  { %4366 = vmatpush3.msra.mxu0 %v2518_v20  ;;  %4428 = vmatprep.mubr.msk.f32.mxu1 %vm4632_vm0, %v4631_v0  ;;  %v2921_v20 = vld [vmem:[#allocation5 + $0x88] sm:$0xff]  ;;  %v3051_v27 = vsub.f32 %v5709_v8, %v3050_v4  ;;  %v3058_v44 = vsub.f32 %v5720_v18, %v3057_v19 }
 0x78f   :  { %4367 = vmatprep.subr.mxu0 %v4631_v0  ;;  %4413 = vmatpush3.msra.mxu1 %v3038_v15  ;;  %v5730_v21 = vand.u32 4294901760, %v2921_v20 }
 0x790   :  { %4368 = vmatpush3.msra.mxu0 %v2525_v22  ;;  %4414 = vmatprep.subr.mxu1 %v4631_v0  ;;  %v5734_v22 = vsub.f32 %v2922_v10, %v5723_v17  ;;  %v3052_v29 = vand.u32 4294901760, %v3051_v27  ;;  %v3059_v53 = vand.u32 4294901760, %v3058_v44 }
 0x791   :  { %4369 = vmatprep.subr.mxu0 %v4631_v0  ;;  %4415 = vmatpush3.msra.mxu1 %v3045_v23  ;;  %v5741_v45 = vsub.f32 %v2921_v20, %v5730_v21 }
 0x792   :  { %4370 = vmatpush3.msra.mxu0 %v2532_v46  ;;  %v5743_v46 = vand.u32 4294901760, %v2920_v28  ;;  %4416 = vmatprep.subr.mxu1 %v4631_v0  ;;  %v3064_v48 = vand.u32 4294901760, %v5734_v22 }
 0x793   :  { %4372 = vmatmul.mubr.f32.vlgmr.msra.gmra.mxu0 %v5597_v51  ;;  %4393 = vmatprep.subr.mxu0 %v4631_v0  ;;  %v3071_v54 = vand.u32 4294901760, %v5741_v45 }
 0x794   :  { %4409 = vmatprep.mubr.msk.f32.mxu0 %vm4632_vm0, %v4631_v0  ;;  %4394 = vmatpush3.msra.mxu0 %v5687_v1  ;;  %v5751_v55 = vsub.f32 %v2920_v28, %v5743_v46  ;;  %v3065_v57 = vsub.f32 %v5734_v22, %v3064_v48 }
 0x795   :  { %4395 = vmatprep.subr.mxu0 %v4631_v0  ;;  %4417 = vmatpush3.msra.mxu1 %v3052_v29  ;;  %v3072_v59 = vsub.f32 %v5741_v45, %v3071_v54 }
 0x796   :  { %4396 = vmatpush3.msra.mxu0 %v5692_v26  ;;  %4418 = vmatprep.subr.mxu1 %v4631_v0  ;;  %v3078_v61 = vand.u32 4294901760, %v5751_v55  ;;  %v3066_v30 = vand.u32 4294901760, %v3065_v57 }
 0x797   :  { %4397 = vmatprep.subr.mxu0 %v4631_v0  ;;  %4419 = vmatpush3.msra.mxu1 %v3059_v53  ;;  %v3073_v5 = vand.u32 4294901760, %v3072_v59 }
 0x798   :  { %4398 = vmatpush3.msra.mxu0 %v5700_v36  ;;  %4420 = vmatprep.subr.mxu1 %v4631_v0  ;;  %v3079_v50 = vsub.f32 %v5751_v55, %v3078_v61 }
 0x799   :  { %4399 = vmatprep.subr.mxu0 %v4631_v0  ;;  %4421 = vmatpush3.msra.mxu1 %v3066_v30 }
 0x79a   :  { %4400 = vmatpush3.msra.mxu0 %v5711_v9  ;;  %4422 = vmatprep.subr.mxu1 %v4631_v0  ;;  %v3080_v62 = vand.u32 4294901760, %v3079_v50 }
 0x79b   :  { %4401 = vmatprep.subr.mxu0 %v4631_v0  ;;  %4423 = vmatpush3.msra.mxu1 %v3073_v5 }
 0x79c   :  { %4402 = vmatpush3.msra.mxu0 %v5723_v17  ;;  %4424 = vmatprep.subr.mxu1 %v4631_v0 }
 0x79d   :  { %4403 = vmatprep.subr.mxu0 %v4631_v0  ;;  %4425 = vmatpush3.msra.mxu1 %v3080_v62 }
 0x79e   :  { %4404 = vmatpush3.msra.mxu0 %v5730_v21  ;;  %4426 = vmatprep.subr.mxu1 %v4631_v0 }
 0x79f   :  { %4405 = vmatprep.subr.mxu0 %v4631_v0  ;;  %4427 = vmatpush3.msra.mxu1 %v3087_v24 }
 0x7a0   :  { %4406 = vmatpush3.msra.mxu0 %v5743_v46  ;;  %4450 = vmatprep.subr.mxu1 %v4631_v0 }
 0x7a1   :  { %4407 = vmatprep.subr.mxu0 %v4631_v0 }
 0x7a2   :  { %4408 = vmatpush3.msra.mxu0 %v5753_v56 }
 0x7a3   :  { %4431 = vmatprep.subr.mxu0 %v4631_v0 }
 0x829   :  { %v2571_v32 = vpop.f32.mrf.mxu1 }
 0x82b   :  { %v4316_v33 = vpop.f32.mrf.mxu1 }
 0x831   :  { %v2460_v37 = vpop.f32.mrf.mxu0 }
 0x832   :  { %v2461_v12 = vadd.f32 %v2460_v37, %v2377_v11 }
 0x833   :  { %v4297_v38 = vpop.f32.mrf.mxu0 }
 0x834   :  { %v2572_v63 = vadd.f32 %v2571_v32, %v2461_v12 }
 0x839   :  { %v2740_v39 = vpop.f32.mrf.mxu1 }
 0x83b   :  { %v4354_v43 = vpop.f32.mrf.mxu1 }
 0x842   :  { %v2659_v51 = vpop.f32.mrf.mxu0 }
 0x843   :  { %v2660_v31 = vadd.f32 %v2659_v51, %v2572_v63 }
 0x844   :  { %v4335_v52 = vpop.f32.mrf.mxu0 }
 0x845   :  { %v2741_v40 = vadd.f32 %v2740_v39, %v2660_v31 }
 0x84b   :  { %v2914_v13 = vpop.f32.mrf.mxu1 }
 0x84d   :  { %v4392_v7 = vpop.f32.mrf.mxu1 }
 0x853   :  { %v2835_v41 = vpop.f32.mrf.mxu0 }
 0x854   :  { %v2836_v10 = vadd.f32 %v2835_v41, %v2741_v40 }
 0x855   :  { %v4373_v15 = vpop.f32.mrf.mxu0 }
 0x856   :  { %v2915_v16 = vadd.f32 %v2914_v13, %v2836_v10 }
 0x858   :  { %v2918_v20 = vmax.f32 %v2915_v16, 0.0 }
 0x85a   :  { %v2932_v23 = vsel %vm72_vm1, %v2918_v20, 0 }
 0x85b   :  { %v5786_v27 = vand.u32 4294901760, %v2932_v23 }
 0x85d   :  { %v3008_v28 = vsub.f32 %v2932_v23, %v5786_v27  ;;  %4429 = vmatmul.mubr.f32.vlgmr.msra.gmra.mxu1 %v5786_v27 }
 0x85e   :  { %4451 = vmatpush3.msra.mxu1 %v5687_v1  ;;  %4466 = vmatprep.mubr.msk.f32.mxu1 %vm4632_vm0, %v4631_v0 }
 0x85f   :  { %4452 = vmatprep.subr.mxu1 %v4631_v0  ;;  %v3009_v29 = vand.u32 4294901760, %v3008_v28 }
 0x860   :  { %4453 = vmatpush3.msra.mxu1 %v5692_v26 }
 0x861   :  { %4454 = vmatprep.subr.mxu1 %v4631_v0  ;;  %v3010_v44 = vsub.f32 %v3008_v28, %v3009_v29 }
 0x862   :  { %4455 = vmatpush3.msra.mxu1 %v5700_v36 }
 0x863   :  { %4456 = vmatprep.subr.mxu1 %v4631_v0  ;;  %v3011_v49 = vand.u32 4294901760, %v3010_v44 }
 0x864   :  { %4457 = vmatpush3.msra.mxu1 %v5711_v9 }
 0x865   :  { %4458 = vmatprep.subr.mxu1 %v4631_v0  ;;  %4410 = vmatmul.mubr.f32.vlgmr.msra.gmra.mxu0 %v3011_v49 }
 0x866   :  { %4432 = vmatpush3.msra.mxu0 %v5690_v25  ;;  %4459 = vmatpush3.msra.mxu1 %v5723_v17 }
 0x867   :  { %4433 = vmatprep.subr.mxu0 %v4631_v0  ;;  %4460 = vmatprep.subr.mxu1 %v4631_v0 }
 0x868   :  { %4434 = vmatpush3.msra.mxu0 %v5698_v35  ;;  %4461 = vmatpush3.msra.mxu1 %v5730_v21 }
 0x869   :  { %4435 = vmatprep.subr.mxu0 %v4631_v0  ;;  %4462 = vmatprep.subr.mxu1 %v4631_v0 }
 0x86a   :  { %4436 = vmatpush3.msra.mxu0 %v5709_v8  ;;  %4463 = vmatpush3.msra.mxu1 %v5743_v46 }
 0x86b   :  { %4437 = vmatprep.subr.mxu0 %v4631_v0  ;;  %4464 = vmatprep.subr.mxu1 %v4631_v0 }
 0x86c   :  { %4438 = vmatpush3.msra.mxu0 %v5720_v18  ;;  %4465 = vmatpush3.msra.mxu1 %v5753_v56 }
 0x86d   :  { %4439 = vmatprep.subr.mxu0 %v4631_v0  ;;  %4467 = vmatmul.mubr.f32.vlgmr.msra.gmra.mxu1 %v3009_v29 }
 0x86e   :  { %4488 = vmatprep.subr.mxu1 %v4631_v0  ;;  %4440 = vmatpush3.msra.mxu0 %v5734_v22 }
 0x86f   :  { %4489 = vmatpush3.msra.mxu1 %v5687_v1  ;;  %4441 = vmatprep.subr.mxu0 %v4631_v0 }
 0x870   :  { %4490 = vmatprep.subr.mxu1 %v4631_v0  ;;  %4442 = vmatpush3.msra.mxu0 %v5741_v45 }
 0x871   :  { %4491 = vmatpush3.msra.mxu1 %v5692_v26  ;;  %4443 = vmatprep.subr.mxu0 %v4631_v0 }
 0x872   :  { %4492 = vmatprep.subr.mxu1 %v4631_v0  ;;  %4444 = vmatpush3.msra.mxu0 %v5751_v55 }
 0x873   :  { %4493 = vmatpush3.msra.mxu1 %v5700_v36  ;;  %4445 = vmatprep.subr.mxu0 %v4631_v0 }
 0x874   :  { %4494 = vmatprep.subr.mxu1 %v4631_v0  ;;  %4446 = vmatpush3.msra.mxu0 %v5766_v6 }
 0x875   :  { %4447 = vmatprep.mubr.msk.f32.mxu0 %vm4632_vm0, %v4631_v0  ;;  %4495 = vmatpush3.msra.mxu1 %v5711_v9 }
 0x876   :  { %4448 = vmatmul.mubr.f32.vlgmr.msra.gmra.mxu0 %v3008_v28  ;;  %4469 = vmatprep.subr.mxu0 %v4631_v0 }
 0x877   :  { %4496 = vmatprep.subr.mxu1 %v4631_v0  ;;  %4470 = vmatpush3.msra.mxu0 %v3036_v34 }
 0x878   :  { %4497 = vmatpush3.msra.mxu1 %v5723_v17  ;;  %4471 = vmatprep.subr.mxu0 %v4631_v0 }
 0x879   :  { %4498 = vmatprep.subr.mxu1 %v4631_v0  ;;  %4472 = vmatpush3.msra.mxu0 %v3043_v42  ;;  %v2929_v42 = vsub.s32 5, %v4863_v2 }
 0x87a   :  { %4499 = vmatpush3.msra.mxu1 %v5730_v21  ;;  %4473 = vmatprep.subr.mxu0 %v4631_v0 }
 0x87b   :  { %4500 = vmatprep.subr.mxu1 %v4631_v0  ;;  %4474 = vmatpush3.msra.mxu0 %v3050_v4  ;;  %v2930_v9 = vrot.slane %v5591_v3, %v2929_v42 }
 0x87c   :  { %4501 = vmatpush3.msra.mxu1 %v5743_v46  ;;  %4475 = vmatprep.subr.mxu0 %v4631_v0 }
 0x87d   :  { %4502 = vmatprep.subr.mxu1 %v4631_v0  ;;  %4476 = vmatpush3.msra.mxu0 %v3057_v19 }
 0x87e   :  { %4503 = vmatpush3.msra.mxu1 %v5753_v56  ;;  %4504 = vmatprep.mubr.msk.f32.mxu1 %vm4632_vm0, %v4631_v0 }
 0x87f   :  { %4477 = vmatprep.subr.mxu0 %v4631_v0  ;;  %4505 = vmatmul.mubr.f32.vlgmr.msra.gmra.mxu1 %v5786_v27 }
 0x880   :  { %4478 = vmatpush3.msra.mxu0 %v3064_v48  ;;  %4485 = vmatprep.mubr.msk.f32.mxu0 %vm4632_vm0, %v4631_v0 }
 0x881   :  { %4479 = vmatprep.subr.mxu0 %v4631_v0 }
 0x882   :  { %4480 = vmatpush3.msra.mxu0 %v3071_v54  ;;  %v3473_v54 = vpop.permute.xlu1 %3472 }
 0x883   :  { %4481 = vmatprep.subr.mxu0 %v4631_v0 }
 0x884   :  { %4482 = vmatpush3.msra.mxu0 %v3078_v61 }
 0x885   :  { %4483 = vmatprep.subr.mxu0 %v4631_v0 }
 0x886   :  { %4484 = vmatpush3.msra.mxu0 %v3085_v58 }
 0x887   :  { %4486 = vmatmul.mubr.f32.vlgmr.msra.gmra.mxu0 %v5786_v27 }
 0x91d   :  { %v3124_v1 = vpop.f32.mrf.mxu1 }
 0x91f   :  { %v4430_v25 = vpop.f32.mrf.mxu1 }
 0x925   :  { %v3013_v26 = vpop.f32.mrf.mxu0 }
 0x926   :  { %v3014_v18 = vadd.f32 %v3013_v26, %v2930_v9 }
 0x927   :  { %v4411_v34 = vpop.f32.mrf.mxu0 }
 0x928   :  { %v3125_v0 = vadd.f32 %v3124_v1, %v3014_v18 }
 0x92d   :  { %v3293_v35 = vpop.f32.mrf.mxu1 }
 0x92f   :  { %v4468_v36 = vpop.f32.mrf.mxu1 }
 0x936   :  { %v3212_v8 = vpop.f32.mrf.mxu0 }
 0x937   :  { %v3213_v21 = vadd.f32 %v3212_v8, %v3125_v0 }
 0x938   :  { %v4449_v4 = vpop.f32.mrf.mxu0 }
 0x939   :  { %v3294_v22 = vadd.f32 %v3293_v35, %v3213_v21 }
 0x93f   :  { %v3467_v17 = vpop.f32.mrf.mxu1 }
 0x941   :  { %v4506_v19 = vpop.f32.mrf.mxu1 }
 0x947   :  { %v3388_v45 = vpop.f32.mrf.mxu0 }
 0x948   :  { %v3389_v46 = vadd.f32 %v3388_v45, %v3294_v22 }
 0x949   :  { %v4487_v48 = vpop.f32.mrf.mxu0 }
 0x94a   :  { %v3468_v53 = vadd.f32 %v3467_v17, %v3389_v46 }
 0x94c   :  { %v3475_v2 = vsel %vm627_vm2, %v3468_v53, %v5399_v60 }
 0x94d   :  { %v3476_v3 = vsel %vm72_vm1, %v3475_v2, %v3473_v54 }
 0x94e   :  { %v3478_v55 = vsel %vm3477_vm3, %v3476_v3, %v3468_v53 }
 0x94f   :  { %3479 = vst [vmem:[#allocation8] sm:$0xff] %v3478_v55 }
 0x950   :  { %4609 = shalt.err (!%p4606_p5)
}
 0x951   :  { %3489 = dma.vmem_to_hbm [thread:$0]  %s3487_s5, 128, %s5881_s3, [#allocation4]  }
 0x952   :  { %4622 = dma.done.wait [#allocation4], 128  }
 0x953   :  { %4623 = vsyncadd [#allocation4], 4294967168 }
 0x954   :  { %3493 = vsyncpa [#allocation3], 1 }
 0x955   :  { %3494 = vsyncpa [#allocation6], 1 }
 0x956   :  { %3495 = vsyncpa [#allocation4], 1 }

</bundles_post_ra>
